<compile_context>
chip_gen: v6e
topology: v6e:2x2x1
jax: 0.10.0
libtpu: 0.0.40
codegen_flags: <defaults>
</compile_context>

<pallas_src>
import functools

import jax
import jax.numpy as jnp
import numpy as np
from jax import lax
from jax.experimental import pallas as pl
from jax.experimental.pallas import tpu as pltpu


def mhsa_kernel(z_ref, wqkv_ref, wo_ref, bo_ref, mask_ref, out_ref, o_scratch,
                *, num_heads: int, head_dim: int):
    # z_ref: (R, D) with R = B * N (whole batch packed; mask keeps sequences
    # independent).  wqkv_ref: (D, 3D) bf16.  wo_ref: (D, D) bf16.
    R, D = z_ref.shape
    H, hd = num_heads, head_dim

    # ---- fused Q|K|V projection: one bf16 MXU matmul, f32 accumulation ----
    z = z_ref[...].astype(jnp.bfloat16)                                 # (R, D)
    qkv = jnp.dot(z, wqkv_ref[...],
                  preferred_element_type=jnp.float32)                   # (R, 3D) f32
    # Single downcast so every per-head attention matmul sees bf16 operands
    # (native MXU path); the sqrt(head_dim) quirk is already folded into Wq.
    qkv = qkv.astype(jnp.bfloat16)                                      # (R, 3D) bf16

    neg_bias = mask_ref[...]                                            # (R, R) f32
    bias = bo_ref[...].astype(jnp.float32)                              # (1, D)

    for h in range(H):                                                  # static unroll
        q_h = qkv[:, h * hd:(h + 1) * hd]                               # (R, hd) bf16
        k_h = qkv[:, D + h * hd:D + (h + 1) * hd]                       # (R, hd) bf16
        v_h = qkv[:, 2 * D + h * hd:2 * D + (h + 1) * hd]               # (R, hd) bf16

        # scores = q_h @ k_h^T without materializing the transpose (NT form);
        # bf16 operands, f32 result/accumulation.
        s = lax.dot_general(q_h, k_h, (((1,), (1,)), ((), ())),
                            preferred_element_type=jnp.float32)         # (R, R) f32
        s = s + neg_bias                                                # f32 mask add

        # numerically-stable softmax along the key axis (all in f32)
        s = s - jnp.max(s, axis=-1, keepdims=True)
        p = jnp.exp(s)
        p = p * pl.reciprocal(jnp.sum(p, axis=-1, keepdims=True), approx=True)
        # dropout(p=0) is the identity — nothing to do.

        o_h = jnp.dot(p.astype(jnp.bfloat16), v_h,
                      preferred_element_type=jnp.float32)               # (R, hd) f32

        # Masked lane store into the concat scratch (VPU/vst slack is free
        # here); the Wo projection is then one fused matmul below.
        o_scratch[:, h * hd:(h + 1) * hd] = o_h

    # ---- single fused output projection: (R, D) @ (D, D) + bias ----
    o_all = o_scratch[...].astype(jnp.bfloat16)                          # (R, D) bf16
    out = jnp.dot(o_all, wo_ref[...], preferred_element_type=jnp.float32)
    out_ref[...] = (out + bias).astype(out_ref.dtype)


def multi_head_self_attention(z, wq_t, wk_t, wv_t, wo_t, bo, num_heads: int):
    """z: (B, N, D); w*_t: (D, D) already transposed to (in, out); bo: (1, D)."""
    B, N, D = z.shape
    assert D % num_heads == 0
    hd = D // num_heads

    # Fold the module's quirky scaling (divide by head_dim**-0.5 == multiply
    # by sqrt(head_dim)) into Wq.  sqrt(64) = 8 is a power of two -> exact.
    scale = float(hd) ** 0.5
    wqkv = jnp.concatenate([wq_t * scale, wk_t, wv_t], axis=1).astype(jnp.bfloat16)  # (D, 3D)
    wo_b = wo_t.astype(jnp.bfloat16)                                                  # (D, D)
    bo2 = bo.reshape(1, D).astype(jnp.float32)

    # Whole batch packed into one block; block-diagonal mask (precomputed,
    # static) keeps sequences from attending across batch boundaries.
    R = B * N
    z2 = z.reshape(R, D)
    seg = jnp.arange(R, dtype=jnp.int32) // N
    neg_bias = jnp.where(seg[:, None] == seg[None, :], 0.0, -1e30).astype(jnp.float32)

    kernel = functools.partial(mhsa_kernel, num_heads=num_heads, head_dim=hd)

    out = pl.pallas_call(
        kernel,
        out_shape=jax.ShapeDtypeStruct((R, D), z.dtype),
        grid_spec=pltpu.PrefetchScalarGridSpec(
            num_scalar_prefetch=0,
            grid=(1,),
            in_specs=[
                pl.BlockSpec((R, D), lambda g: (0, 0)),          # packed activations
                pl.BlockSpec((D, 3 * D), lambda g: (0, 0)),      # fused Wqkv (bf16)
                pl.BlockSpec((D, D), lambda g: (0, 0)),          # Wo (bf16)
                pl.BlockSpec((1, D), lambda g: (0, 0)),          # output bias (f32)
                pl.BlockSpec((R, R), lambda g: (0, 0)),          # block-diag mask (f32)
            ],
            out_specs=pl.BlockSpec((R, D), lambda g: (0, 0)),
            scratch_shapes=[pltpu.VMEM((R, D), jnp.float32)],     # per-head concat buffer
        ),
        compiler_params=pltpu.CompilerParams(
            dimension_semantics=("arbitrary",)),
    )(z2, wqkv, wo_b, bo2, neg_bias)

    return out.reshape(B, N, D)


def reference_mhsa(z, wq_t, wk_t, wv_t, wo_t, bo, num_heads, quantize_qkv=False):
    """Plain-JAX reference mirroring the PyTorch forward (for verification).

    With quantize_qkv=True the q/k/v projections are rounded to bf16 before
    the attention matmuls (same quantization points as the kernel) so the
    comparison isolates kernel structure from bf16 rounding.
    """
    B, N, D = z.shape
    hd = D // num_heads
    sqrt_dh = float(hd) ** (-0.5)
    q = (z @ wq_t).reshape(B, N, num_heads, hd).transpose(0, 2, 1, 3)
    k = (z @ wk_t).reshape(B, N, num_heads, hd).transpose(0, 2, 1, 3)
    v = (z @ wv_t).reshape(B, N, num_heads, hd).transpose(0, 2, 1, 3)
    if quantize_qkv:
        rb = lambda a: a.astype(jnp.bfloat16).astype(jnp.float32)
        q, k, v = rb(q), rb(k), rb(v)
    attn = jax.nn.softmax(jnp.einsum("bhqd,bhkd->bhqk", q, k) / sqrt_dh, axis=-1)
    out = jnp.einsum("bhqk,bhkd->bhqd", attn, v)
    out = out.transpose(0, 2, 1, 3).reshape(B, N, D)
    return out @ wo_t + bo


if __name__ == "__main__":
    # Shapes implied by the module usage: VitInputLayer(img=32, patch_row=2,
    # emb_dim=384) -> z0 of shape (batch=2, num_patch+1=5, emb_dim=384);
    # MultiHeadSelfAttention defaults: emb_dim=384, num_heads=6, head_dim=64.
    B, N, D = 2, 5, 384
    num_heads = 6

    key = jax.random.PRNGKey(0)
    kz, kq, kk, kv, ko, kb = jax.random.split(key, 6)

    z = jax.random.normal(kz, (B, N, D), dtype=jnp.float32)

    # nn.Linear weights are (out, in); generate in that shape then transpose.
    init = 1.0 / np.sqrt(D)
    wq = jax.random.uniform(kq, (D, D), jnp.float32, -init, init)
    wk = jax.random.uniform(kk, (D, D), jnp.float32, -init, init)
    wv = jax.random.uniform(kv, (D, D), jnp.float32, -init, init)
    wo = jax.random.uniform(ko, (D, D), jnp.float32, -init, init)
    bo = jax.random.uniform(kb, (1, D), jnp.float32, -init, init)

    wq_t, wk_t, wv_t, wo_t = wq.T, wk.T, wv.T, wo.T

    out = multi_head_self_attention(z, wq_t, wk_t, wv_t, wo_t, bo, num_heads)
    out = jax.block_until_ready(out)

    # Reference uses the same bf16 quantization points (inputs, weights and the
    # q/k/v projections, all upcast to f32 for the math) so the comparison
    # isolates kernel structure from bf16 rounding.  Tolerance covers the
    # remaining kernel-only approximations (bf16 p, bf16 o, approx reciprocal).
    rb = lambda a: a.astype(jnp.bfloat16).astype(jnp.float32)
    ref = reference_mhsa(rb(z), rb(wq_t), rb(wk_t), rb(wv_t), rb(wo_t), bo,
                         num_heads, quantize_qkv=True)

    np.testing.assert_allclose(np.asarray(out), np.asarray(ref),
                               rtol=2e-2, atol=2e-2)
    print("KERNEL_OK")
</pallas_src>

<mosaic_0001>
module attributes {stable_mosaic.version = 11 : i64} {
  func.func @mhsa_kernel(%arg0: i32, %arg1: memref<10x384xf32, #tpu.memory_space<vmem>>, %arg2: memref<384x1152xbf16, #tpu.memory_space<vmem>>, %arg3: memref<384x384xbf16, #tpu.memory_space<vmem>>, %arg4: memref<1x384xf32, #tpu.memory_space<vmem>>, %arg5: memref<10x10xf32, #tpu.memory_space<vmem>>, %arg6: memref<10x384xf32, #tpu.memory_space<vmem>>, %arg7: memref<10x384xf32, #tpu.memory_space<vmem>>) attributes {dimension_semantics = [#tpu.dimension_semantics<arbitrary>], iteration_bounds = array<i64: 1>, scalar_prefetch = 0 : i64, scratch_operands = 1 : i64, tpu.core_type = #tpu.core_type<tc>, window_params = [{pipeline_mode = #tpu.pipeline_mode<synchronous>, transform_indices = @transform_0, window_bounds = array<i64: 10, 384>}, {pipeline_mode = #tpu.pipeline_mode<synchronous>, transform_indices = @transform_1, window_bounds = array<i64: 384, 1152>}, {pipeline_mode = #tpu.pipeline_mode<synchronous>, transform_indices = @transform_2, window_bounds = array<i64: 384, 384>}, {pipeline_mode = #tpu.pipeline_mode<synchronous>, transform_indices = @transform_3, window_bounds = array<i64: 1, 384>}, {pipeline_mode = #tpu.pipeline_mode<synchronous>, transform_indices = @transform_4, window_bounds = array<i64: 10, 10>}, {pipeline_mode = #tpu.pipeline_mode<synchronous>, transform_indices = @transform_5, window_bounds = array<i64: 10, 384>}]} {
    %c0 = arith.constant 0 : index
    %c0_0 = arith.constant 0 : index
    %0 = vector.load %arg1[%c0, %c0_0] : memref<10x384xf32, #tpu.memory_space<vmem>>, vector<10x384xf32>
    %1 = arith.truncf %0 : vector<10x384xf32> to vector<10x384xbf16>
    %c0_1 = arith.constant 0 : index
    %c0_2 = arith.constant 0 : index
    %2 = vector.load %arg2[%c0_1, %c0_2] : memref<384x1152xbf16, #tpu.memory_space<vmem>>, vector<384x1152xbf16>
    %cst = arith.constant dense<0.000000e+00> : vector<10x1152xf32>
    %3 = tpu.matmul %1, %2, %cst {dimension_numbers = #tpu.dot_dimension_numbers<[1], [0], [0], [1], [0, 0, 1, 1], [], []>} : vector<10x384xbf16>, vector<384x1152xbf16>, vector<10x1152xf32> -> vector<10x1152xf32>
    %4 = arith.truncf %3 : vector<10x1152xf32> to vector<10x1152xbf16>
    %c0_3 = arith.constant 0 : index
    %c0_4 = arith.constant 0 : index
    %5 = vector.load %arg5[%c0_3, %c0_4] : memref<10x10xf32, #tpu.memory_space<vmem>>, vector<10x10xf32>
    %c0_5 = arith.constant 0 : index
    %c0_6 = arith.constant 0 : index
    %6 = vector.load %arg4[%c0_5, %c0_6] : memref<1x384xf32, #tpu.memory_space<vmem>>, vector<1x384xf32>
    %7 = vector.extract_strided_slice %4 {offsets = [0, 0], sizes = [10, 64], strides = [1, 1]} : vector<10x1152xbf16> to vector<10x64xbf16>
    %8 = vector.extract_strided_slice %4 {offsets = [0, 384], sizes = [10, 64], strides = [1, 1]} : vector<10x1152xbf16> to vector<10x64xbf16>
    %9 = vector.extract_strided_slice %4 {offsets = [0, 768], sizes = [10, 64], strides = [1, 1]} : vector<10x1152xbf16> to vector<10x64xbf16>
    %cst_7 = arith.constant dense<0.000000e+00> : vector<10x10xf32>
    %10 = tpu.matmul %7, %8, %cst_7 {dimension_numbers = #tpu.dot_dimension_numbers<[1], [1], [0], [0], [0, 0, 1, 0], [], []>} : vector<10x64xbf16>, vector<10x64xbf16>, vector<10x10xf32> -> vector<10x10xf32>
    %11 = arith.addf %10, %5 : vector<10x10xf32>
    %cst_8 = arith.constant dense<0xFF800000> : vector<10xf32>
    %12 = vector.multi_reduction <maximumf>, %11, %cst_8 [1] : vector<10x10xf32> to vector<10xf32>
    %13 = vector.shape_cast %12 : vector<10xf32> to vector<10x1xf32>
    %14 = vector.broadcast %13 : vector<10x1xf32> to vector<10x10xf32>
    %15 = arith.subf %11, %14 : vector<10x10xf32>
    %16 = math.exp %15 : vector<10x10xf32>
    %cst_9 = arith.constant dense<0.000000e+00> : vector<10xf32>
    %17 = vector.multi_reduction <add>, %16, %cst_9 [1] : vector<10x10xf32> to vector<10xf32>
    %18 = vector.shape_cast %17 : vector<10xf32> to vector<10x1xf32>
    %19 = tpu.reciprocal %18 {approx = true} : vector<10x1xf32> -> vector<10x1xf32>
    %20 = vector.broadcast %19 : vector<10x1xf32> to vector<10x10xf32>
    %21 = arith.mulf %16, %20 : vector<10x10xf32>
    %22 = arith.truncf %21 : vector<10x10xf32> to vector<10x10xbf16>
    %cst_10 = arith.constant dense<0.000000e+00> : vector<10x64xf32>
    %23 = tpu.matmul %22, %9, %cst_10 {dimension_numbers = #tpu.dot_dimension_numbers<[1], [0], [0], [1], [0, 0, 1, 1], [], []>} : vector<10x10xbf16>, vector<10x64xbf16>, vector<10x64xf32> -> vector<10x64xf32>
    %c0_11 = arith.constant 0 : index
    %c0_12 = arith.constant 0 : index
    %24 = vector.load %arg7[%c0_11, %c0_12] : memref<10x384xf32, #tpu.memory_space<vmem>>, vector<10x64xf32>
    tpu.vector_store %arg7[%c0_11, %c0_12], %23 {strides = array<i32>} : memref<10x384xf32, #tpu.memory_space<vmem>>, vector<10x64xf32>,
    %25 = vector.extract_strided_slice %4 {offsets = [0, 64], sizes = [10, 64], strides = [1, 1]} : vector<10x1152xbf16> to vector<10x64xbf16>
    %26 = vector.extract_strided_slice %4 {offsets = [0, 448], sizes = [10, 64], strides = [1, 1]} : vector<10x1152xbf16> to vector<10x64xbf16>
    %27 = vector.extract_strided_slice %4 {offsets = [0, 832], sizes = [10, 64], strides = [1, 1]} : vector<10x1152xbf16> to vector<10x64xbf16>
    %cst_13 = arith.constant dense<0.000000e+00> : vector<10x10xf32>
    %28 = tpu.matmul %25, %26, %cst_13 {dimension_numbers = #tpu.dot_dimension_numbers<[1], [1], [0], [0], [0, 0, 1, 0], [], []>} : vector<10x64xbf16>, vector<10x64xbf16>, vector<10x10xf32> -> vector<10x10xf32>
    %29 = arith.addf %28, %5 : vector<10x10xf32>
    %cst_14 = arith.constant dense<0xFF800000> : vector<10xf32>
    %30 = vector.multi_reduction <maximumf>, %29, %cst_14 [1] : vector<10x10xf32> to vector<10xf32>
    %31 = vector.shape_cast %30 : vector<10xf32> to vector<10x1xf32>
    %32 = vector.broadcast %31 : vector<10x1xf32> to vector<10x10xf32>
    %33 = arith.subf %29, %32 : vector<10x10xf32>
    %34 = math.exp %33 : vector<10x10xf32>
    %cst_15 = arith.constant dense<0.000000e+00> : vector<10xf32>
    %35 = vector.multi_reduction <add>, %34, %cst_15 [1] : vector<10x10xf32> to vector<10xf32>
    %36 = vector.shape_cast %35 : vector<10xf32> to vector<10x1xf32>
    %37 = tpu.reciprocal %36 {approx = true} : vector<10x1xf32> -> vector<10x1xf32>
    %38 = vector.broadcast %37 : vector<10x1xf32> to vector<10x10xf32>
    %39 = arith.mulf %34, %38 : vector<10x10xf32>
    %40 = arith.truncf %39 : vector<10x10xf32> to vector<10x10xbf16>
    %cst_16 = arith.constant dense<0.000000e+00> : vector<10x64xf32>
    %41 = tpu.matmul %40, %27, %cst_16 {dimension_numbers = #tpu.dot_dimension_numbers<[1], [0], [0], [1], [0, 0, 1, 1], [], []>} : vector<10x10xbf16>, vector<10x64xbf16>, vector<10x64xf32> -> vector<10x64xf32>
    %c0_17 = arith.constant 0 : index
    %c64 = arith.constant 64 : index
    %42 = vector.load %arg7[%c0_17, %c64] : memref<10x384xf32, #tpu.memory_space<vmem>>, vector<10x64xf32>
    tpu.vector_store %arg7[%c0_17, %c64], %41 {strides = array<i32>} : memref<10x384xf32, #tpu.memory_space<vmem>>, vector<10x64xf32>,
    %43 = vector.extract_strided_slice %4 {offsets = [0, 128], sizes = [10, 64], strides = [1, 1]} : vector<10x1152xbf16> to vector<10x64xbf16>
    %44 = vector.extract_strided_slice %4 {offsets = [0, 512], sizes = [10, 64], strides = [1, 1]} : vector<10x1152xbf16> to vector<10x64xbf16>
    %45 = vector.extract_strided_slice %4 {offsets = [0, 896], sizes = [10, 64], strides = [1, 1]} : vector<10x1152xbf16> to vector<10x64xbf16>
    %cst_18 = arith.constant dense<0.000000e+00> : vector<10x10xf32>
    %46 = tpu.matmul %43, %44, %cst_18 {dimension_numbers = #tpu.dot_dimension_numbers<[1], [1], [0], [0], [0, 0, 1, 0], [], []>} : vector<10x64xbf16>, vector<10x64xbf16>, vector<10x10xf32> -> vector<10x10xf32>
    %47 = arith.addf %46, %5 : vector<10x10xf32>
    %cst_19 = arith.constant dense<0xFF800000> : vector<10xf32>
    %48 = vector.multi_reduction <maximumf>, %47, %cst_19 [1] : vector<10x10xf32> to vector<10xf32>
    %49 = vector.shape_cast %48 : vector<10xf32> to vector<10x1xf32>
    %50 = vector.broadcast %49 : vector<10x1xf32> to vector<10x10xf32>
    %51 = arith.subf %47, %50 : vector<10x10xf32>
    %52 = math.exp %51 : vector<10x10xf32>
    %cst_20 = arith.constant dense<0.000000e+00> : vector<10xf32>
    %53 = vector.multi_reduction <add>, %52, %cst_20 [1] : vector<10x10xf32> to vector<10xf32>
    %54 = vector.shape_cast %53 : vector<10xf32> to vector<10x1xf32>
    %55 = tpu.reciprocal %54 {approx = true} : vector<10x1xf32> -> vector<10x1xf32>
    %56 = vector.broadcast %55 : vector<10x1xf32> to vector<10x10xf32>
    %57 = arith.mulf %52, %56 : vector<10x10xf32>
    %58 = arith.truncf %57 : vector<10x10xf32> to vector<10x10xbf16>
    %cst_21 = arith.constant dense<0.000000e+00> : vector<10x64xf32>
    %59 = tpu.matmul %58, %45, %cst_21 {dimension_numbers = #tpu.dot_dimension_numbers<[1], [0], [0], [1], [0, 0, 1, 1], [], []>} : vector<10x10xbf16>, vector<10x64xbf16>, vector<10x64xf32> -> vector<10x64xf32>
    %c0_22 = arith.constant 0 : index
    %c128 = arith.constant 128 : index
    %60 = vector.load %arg7[%c0_22, %c128] : memref<10x384xf32, #tpu.memory_space<vmem>>, vector<10x64xf32>
    tpu.vector_store %arg7[%c0_22, %c128], %59 {strides = array<i32>} : memref<10x384xf32, #tpu.memory_space<vmem>>, vector<10x64xf32>,
    %61 = vector.extract_strided_slice %4 {offsets = [0, 192], sizes = [10, 64], strides = [1, 1]} : vector<10x1152xbf16> to vector<10x64xbf16>
    %62 = vector.extract_strided_slice %4 {offsets = [0, 576], sizes = [10, 64], strides = [1, 1]} : vector<10x1152xbf16> to vector<10x64xbf16>
    %63 = vector.extract_strided_slice %4 {offsets = [0, 960], sizes = [10, 64], strides = [1, 1]} : vector<10x1152xbf16> to vector<10x64xbf16>
    %cst_23 = arith.constant dense<0.000000e+00> : vector<10x10xf32>
    %64 = tpu.matmul %61, %62, %cst_23 {dimension_numbers = #tpu.dot_dimension_numbers<[1], [1], [0], [0], [0, 0, 1, 0], [], []>} : vector<10x64xbf16>, vector<10x64xbf16>, vector<10x10xf32> -> vector<10x10xf32>
    %65 = arith.addf %64, %5 : vector<10x10xf32>
    %cst_24 = arith.constant dense<0xFF800000> : vector<10xf32>
    %66 = vector.multi_reduction <maximumf>, %65, %cst_24 [1] : vector<10x10xf32> to vector<10xf32>
    %67 = vector.shape_cast %66 : vector<10xf32> to vector<10x1xf32>
    %68 = vector.broadcast %67 : vector<10x1xf32> to vector<10x10xf32>
    %69 = arith.subf %65, %68 : vector<10x10xf32>
    %70 = math.exp %69 : vector<10x10xf32>
    %cst_25 = arith.constant dense<0.000000e+00> : vector<10xf32>
    %71 = vector.multi_reduction <add>, %70, %cst_25 [1] : vector<10x10xf32> to vector<10xf32>
    %72 = vector.shape_cast %71 : vector<10xf32> to vector<10x1xf32>
    %73 = tpu.reciprocal %72 {approx = true} : vector<10x1xf32> -> vector<10x1xf32>
    %74 = vector.broadcast %73 : vector<10x1xf32> to vector<10x10xf32>
    %75 = arith.mulf %70, %74 : vector<10x10xf32>
    %76 = arith.truncf %75 : vector<10x10xf32> to vector<10x10xbf16>
    %cst_26 = arith.constant dense<0.000000e+00> : vector<10x64xf32>
    %77 = tpu.matmul %76, %63, %cst_26 {dimension_numbers = #tpu.dot_dimension_numbers<[1], [0], [0], [1], [0, 0, 1, 1], [], []>} : vector<10x10xbf16>, vector<10x64xbf16>, vector<10x64xf32> -> vector<10x64xf32>
    %c0_27 = arith.constant 0 : index
    %c192 = arith.constant 192 : index
    %78 = vector.load %arg7[%c0_27, %c192] : memref<10x384xf32, #tpu.memory_space<vmem>>, vector<10x64xf32>
    tpu.vector_store %arg7[%c0_27, %c192], %77 {strides = array<i32>} : memref<10x384xf32, #tpu.memory_space<vmem>>, vector<10x64xf32>,
    %79 = vector.extract_strided_slice %4 {offsets = [0, 256], sizes = [10, 64], strides = [1, 1]} : vector<10x1152xbf16> to vector<10x64xbf16>
    %80 = vector.extract_strided_slice %4 {offsets = [0, 640], sizes = [10, 64], strides = [1, 1]} : vector<10x1152xbf16> to vector<10x64xbf16>
    %81 = vector.extract_strided_slice %4 {offsets = [0, 1024], sizes = [10, 64], strides = [1, 1]} : vector<10x1152xbf16> to vector<10x64xbf16>
    %cst_28 = arith.constant dense<0.000000e+00> : vector<10x10xf32>
    %82 = tpu.matmul %79, %80, %cst_28 {dimension_numbers = #tpu.dot_dimension_numbers<[1], [1], [0], [0], [0, 0, 1, 0], [], []>} : vector<10x64xbf16>, vector<10x64xbf16>, vector<10x10xf32> -> vector<10x10xf32>
    %83 = arith.addf %82, %5 : vector<10x10xf32>
    %cst_29 = arith.constant dense<0xFF800000> : vector<10xf32>
    %84 = vector.multi_reduction <maximumf>, %83, %cst_29 [1] : vector<10x10xf32> to vector<10xf32>
    %85 = vector.shape_cast %84 : vector<10xf32> to vector<10x1xf32>
    %86 = vector.broadcast %85 : vector<10x1xf32> to vector<10x10xf32>
    %87 = arith.subf %83, %86 : vector<10x10xf32>
    %88 = math.exp %87 : vector<10x10xf32>
    %cst_30 = arith.constant dense<0.000000e+00> : vector<10xf32>
    %89 = vector.multi_reduction <add>, %88, %cst_30 [1] : vector<10x10xf32> to vector<10xf32>
    %90 = vector.shape_cast %89 : vector<10xf32> to vector<10x1xf32>
    %91 = tpu.reciprocal %90 {approx = true} : vector<10x1xf32> -> vector<10x1xf32>
    %92 = vector.broadcast %91 : vector<10x1xf32> to vector<10x10xf32>
    %93 = arith.mulf %88, %92 : vector<10x10xf32>
    %94 = arith.truncf %93 : vector<10x10xf32> to vector<10x10xbf16>
    %cst_31 = arith.constant dense<0.000000e+00> : vector<10x64xf32>
    %95 = tpu.matmul %94, %81, %cst_31 {dimension_numbers = #tpu.dot_dimension_numbers<[1], [0], [0], [1], [0, 0, 1, 1], [], []>} : vector<10x10xbf16>, vector<10x64xbf16>, vector<10x64xf32> -> vector<10x64xf32>
    %c0_32 = arith.constant 0 : index
    %c256 = arith.constant 256 : index
    %96 = vector.load %arg7[%c0_32, %c256] : memref<10x384xf32, #tpu.memory_space<vmem>>, vector<10x64xf32>
    tpu.vector_store %arg7[%c0_32, %c256], %95 {strides = array<i32>} : memref<10x384xf32, #tpu.memory_space<vmem>>, vector<10x64xf32>,
    %97 = vector.extract_strided_slice %4 {offsets = [0, 320], sizes = [10, 64], strides = [1, 1]} : vector<10x1152xbf16> to vector<10x64xbf16>
    %98 = vector.extract_strided_slice %4 {offsets = [0, 704], sizes = [10, 64], strides = [1, 1]} : vector<10x1152xbf16> to vector<10x64xbf16>
    %99 = vector.extract_strided_slice %4 {offsets = [0, 1088], sizes = [10, 64], strides = [1, 1]} : vector<10x1152xbf16> to vector<10x64xbf16>
    %cst_33 = arith.constant dense<0.000000e+00> : vector<10x10xf32>
    %100 = tpu.matmul %97, %98, %cst_33 {dimension_numbers = #tpu.dot_dimension_numbers<[1], [1], [0], [0], [0, 0, 1, 0], [], []>} : vector<10x64xbf16>, vector<10x64xbf16>, vector<10x10xf32> -> vector<10x10xf32>
    %101 = arith.addf %100, %5 : vector<10x10xf32>
    %cst_34 = arith.constant dense<0xFF800000> : vector<10xf32>
    %102 = vector.multi_reduction <maximumf>, %101, %cst_34 [1] : vector<10x10xf32> to vector<10xf32>
    %103 = vector.shape_cast %102 : vector<10xf32> to vector<10x1xf32>
    %104 = vector.broadcast %103 : vector<10x1xf32> to vector<10x10xf32>
    %105 = arith.subf %101, %104 : vector<10x10xf32>
    %106 = math.exp %105 : vector<10x10xf32>
    %cst_35 = arith.constant dense<0.000000e+00> : vector<10xf32>
    %107 = vector.multi_reduction <add>, %106, %cst_35 [1] : vector<10x10xf32> to vector<10xf32>
    %108 = vector.shape_cast %107 : vector<10xf32> to vector<10x1xf32>
    %109 = tpu.reciprocal %108 {approx = true} : vector<10x1xf32> -> vector<10x1xf32>
    %110 = vector.broadcast %109 : vector<10x1xf32> to vector<10x10xf32>
    %111 = arith.mulf %106, %110 : vector<10x10xf32>
    %112 = arith.truncf %111 : vector<10x10xf32> to vector<10x10xbf16>
    %cst_36 = arith.constant dense<0.000000e+00> : vector<10x64xf32>
    %113 = tpu.matmul %112, %99, %cst_36 {dimension_numbers = #tpu.dot_dimension_numbers<[1], [0], [0], [1], [0, 0, 1, 1], [], []>} : vector<10x10xbf16>, vector<10x64xbf16>, vector<10x64xf32> -> vector<10x64xf32>
    %c0_37 = arith.constant 0 : index
    %c320 = arith.constant 320 : index
    %114 = vector.load %arg7[%c0_37, %c320] : memref<10x384xf32, #tpu.memory_space<vmem>>, vector<10x64xf32>
    tpu.vector_store %arg7[%c0_37, %c320], %113 {strides = array<i32>} : memref<10x384xf32, #tpu.memory_space<vmem>>, vector<10x64xf32>,
    %c0_38 = arith.constant 0 : index
    %c0_39 = arith.constant 0 : index
    %115 = vector.load %arg7[%c0_38, %c0_39] : memref<10x384xf32, #tpu.memory_space<vmem>>, vector<10x384xf32>
    %116 = arith.truncf %115 : vector<10x384xf32> to vector<10x384xbf16>
    %c0_40 = arith.constant 0 : index
    %c0_41 = arith.constant 0 : index
    %117 = vector.load %arg3[%c0_40, %c0_41] : memref<384x384xbf16, #tpu.memory_space<vmem>>, vector<384x384xbf16>
    %cst_42 = arith.constant dense<0.000000e+00> : vector<10x384xf32>
    %118 = tpu.matmul %116, %117, %cst_42 {dimension_numbers = #tpu.dot_dimension_numbers<[1], [0], [0], [1], [0, 0, 1, 1], [], []>} : vector<10x384xbf16>, vector<384x384xbf16>, vector<10x384xf32> -> vector<10x384xf32>
    %119 = vector.broadcast %6 : vector<1x384xf32> to vector<10x384xf32>
    %120 = arith.addf %118, %119 : vector<10x384xf32>
    %c0_43 = arith.constant 0 : index
    %c0_44 = arith.constant 0 : index
    %121 = vector.load %arg6[%c0_43, %c0_44] : memref<10x384xf32, #tpu.memory_space<vmem>>, vector<10x384xf32>
    tpu.vector_store %arg6[%c0_43, %c0_44], %120 {strides = array<i32>} : memref<10x384xf32, #tpu.memory_space<vmem>>, vector<10x384xf32>,
    return
  }
  func.func @transform_0(%arg0: i32) -> (i32, i32) {
    %c0_i32 = arith.constant 0 : i32
    %c0_i32_0 = arith.constant 0 : i32
    %c0_i32_1 = arith.constant 0 : i32
    return %c0_i32, %c0_i32_0 : i32, i32
  }
  func.func @transform_1(%arg0: i32) -> (i32, i32) {
    %c0_i32 = arith.constant 0 : i32
    %c0_i32_0 = arith.constant 0 : i32
    %c0_i32_1 = arith.constant 0 : i32
    return %c0_i32, %c0_i32_0 : i32, i32
  }
  func.func @transform_2(%arg0: i32) -> (i32, i32) {
    %c0_i32 = arith.constant 0 : i32
    %c0_i32_0 = arith.constant 0 : i32
    %c0_i32_1 = arith.constant 0 : i32
    return %c0_i32, %c0_i32_0 : i32, i32
  }
  func.func @transform_3(%arg0: i32) -> (i32, i32) {
    %c0_i32 = arith.constant 0 : i32
    %c0_i32_0 = arith.constant 0 : i32
    %c0_i32_1 = arith.constant 0 : i32
    return %c0_i32, %c0_i32_0 : i32, i32
  }
  func.func @transform_4(%arg0: i32) -> (i32, i32) {
    %c0_i32 = arith.constant 0 : i32
    %c0_i32_0 = arith.constant 0 : i32
    %c0_i32_1 = arith.constant 0 : i32
    return %c0_i32, %c0_i32_0 : i32, i32
  }
  func.func @transform_5(%arg0: i32) -> (i32, i32) {
    %c0_i32 = arith.constant 0 : i32
    %c0_i32_0 = arith.constant 0 : i32
    %c0_i32_1 = arith.constant 0 : i32
    return %c0_i32, %c0_i32_0 : i32, i32
  }
}

</mosaic_0001>

<bundles_post_ra>
// kernel: tpu_custom_call.1
= control target key start
LH: loop header
LB: loop body
LE: loop exit
PB: predicated region body
PF: predicated region fallthrough
CT: control target
= control target key end

     0   :  { %10 = vsyncpa [#allocation4], 0  ;;  %s4737_s0 = inlined_call_operand.hbm [shape: f32[10,384], index: 0, kind: input, shape index: {}]   ;;  %s4738_s1 = inlined_call_operand.hbm [shape: bf16[384,1152], index: 1, kind: input, shape index: {}]   ;;  %s4739_s2 = inlined_call_operand.hbm [shape: bf16[384,384], index: 2, kind: input, shape index: {}]   ;;  %s4740_s3 = inlined_call_operand.vmem [shape: f32[1,384], index: 3, kind: input, shape index: {}]   ;;  %s4741_s4 = inlined_call_operand.hbm [shape: f32[10,10], index: 4, kind: input, shape index: {}]   ;;  %s4742_s5 = inlined_call_operand.hbm [shape: f32[10,384], index: 5, kind: output, shape index: {}]  }
   0x1   :  { %11 = vsyncpa [#allocation7], 0 }
   0x2   :  { %12 = vsyncpa [#allocation10], 0 }
   0x3   :  { %13 = vsyncpa [#allocation5], 0  ;;  %s4417_s18 = smov [#allocation6]  }
   0x4   :  { %s31_s19 = sshll.u32 %s4417_s18, 4  ;;  %s32_s19 = int_to_ptr.vmem [resolvable:$true] %s31_s19 }
   0x5   :  { %s4317_s20 = scalar_lea.vmem %s32_s19, 27648  ;;  %p4322_p1 = scmp.lt.s32.totalorder %s32_s19, %s32_s19 }
   0x6   :  { %p4318_p0 = scmp.ne.s32.totalorder %s32_s19, %s4317_s20  ;;  %p4323_p2 = scmp.lt.s32.totalorder %s4317_s20, %s4317_s20 }
   0x8   :  { %p4324_p3 = por %p4323_p2, %p4322_p1 }
   0xa   :  { %p4325_p4 = pnand %p4324_p3, %p4318_p0 }
   0xc   :  { %4328 = shalt.err (!%p4325_p4)
}
   0xd   :  { %s4418_s21 = smov 576   ;;  %s4419_s22 = smov 36  }
   0xe   :  { %37 = dma.hbm_to_vmem [thread:$0]  %s4738_s1, 27648, %s32_s19, [#allocation7], %s4418_s21, %s4418_s21, %s4419_s22  }
   0xf   :  { %s4420_s25 = smov [#allocation3]  }
  0x10   :  { %s19_s26 = sshll.u32 %s4420_s25, 4  ;;  %s20_s26 = int_to_ptr.vmem [resolvable:$true] %s19_s26 }
  0x11   :  { %s4337_s27 = scalar_lea.vmem %s20_s26, 768  ;;  %p4342_p6 = scmp.lt.s32.totalorder %s20_s26, %s20_s26 }
  0x12   :  { %p4338_p5 = scmp.ne.s32.totalorder %s20_s26, %s4337_s27  ;;  %p4343_p7 = scmp.lt.s32.totalorder %s4337_s27, %s4337_s27 }
  0x14   :  { %p4344_p8 = por %p4343_p7, %p4342_p6 }
  0x16   :  { %p4345_p9 = pnand %p4344_p8, %p4338_p5 }
  0x18   :  { %4348 = shalt.err (!%p4345_p9)
}
  0x19   :  { %s4421_s28 = smov 384   ;;  %s4422_s29 = smov 24  }
  0x1a   :  { %25 = dma.hbm_to_vmem [thread:$0]  %s4737_s0, 768, %s20_s26, [#allocation4], %s4421_s28, %s4421_s28, %s4422_s29  }
  0x1b   :  { %s4423_s1 = smov [#allocation8]  }
  0x1c   :  { %s43_s7 = sshll.u32 %s4423_s1, 4  ;;  %s44_s7 = int_to_ptr.vmem [resolvable:$true] %s43_s7 }
  0x1d   :  { %s4357_s8 = scalar_lea.vmem %s44_s7, 9216  ;;  %p4362_p11 = scmp.lt.s32.totalorder %s44_s7, %s44_s7 }
  0x1e   :  { %p4358_p10 = scmp.ne.s32.totalorder %s44_s7, %s4357_s8  ;;  %p4363_p12 = scmp.lt.s32.totalorder %s4357_s8, %s4357_s8 }
  0x20   :  { %p4364_p13 = por %p4363_p12, %p4362_p11 }
  0x22   :  { %p4365_p0 = pnand %p4364_p13, %p4358_p10 }
  0x24   :  { %4368 = shalt.err (!%p4365_p0)
}
  0x25   :  { %s4424_s9 = smov 192   ;;  %s4425_s10 = smov 12  }
  0x26   :  { %49 = dma.hbm_to_vmem [thread:$0]  %s4739_s2, 9216, %s44_s7, [#allocation7], %s4424_s9, %s4424_s9, %s4425_s10  }
  0x27   :  { %s4426_s13 = smov [#allocation9]  }
  0x28   :  { %s57_s14 = sshll.u32 %s4426_s13, 4  ;;  %s58_s14 = int_to_ptr.vmem [resolvable:$true] %s57_s14 }
  0x29   :  { %s4377_s0 = scalar_lea.vmem %s58_s14, 256  ;;  %p4382_p2 = scmp.lt.s32.totalorder %s58_s14, %s58_s14 }
  0x2a   :  { %p4378_p1 = scmp.ne.s32.totalorder %s58_s14, %s4377_s0  ;;  %p4383_p3 = scmp.lt.s32.totalorder %s4377_s0, %s4377_s0 }
  0x2c   :  { %p4384_p4 = por %p4383_p3, %p4382_p2 }
  0x2e   :  { %p4385_p5 = pnand %p4384_p4, %p4378_p1 }
  0x30   :  { %4388 = shalt.err (!%p4385_p5)
}
  0x31   :  { %s4427_s15 = smov 128   ;;  %s4428_s16 = smov 8  }
  0x32   :  { %63 = dma.hbm_to_vmem [thread:$0]  %s4741_s4, 256, %s58_s14, [#allocation10], %s4427_s15, %s4427_s15, %s4428_s16  }
  0x33   :  { %4409 = dma.done.wait [#allocation4], 768  }
  0x34   :  { %4410 = vsyncadd [#allocation4], 4294966528 }
  0x35   :  { %4411 = dma.done.wait [#allocation7], 36864  }
  0x36   :  { %4412 = vsyncadd [#allocation7], 4294930432 }
  0x37   :  { %4413 = dma.done.wait [#allocation10], 256  }
  0x38   :  { %4414 = vsyncadd [#allocation10], 4294967040  ;;  %v4429_v0 = vmov 0   ;;  %v3853_v1 = vld [vmem:[#allocation6 + $0x1fc] ss:$36 sps:$4 sm:$0xff]   ;;  %vm4431_vm0 = vmmov 0  }
  0x39   :  { %1505 = vmatprep.mubr.bf16.mxu1 %v4429_v0  ;;  %v3855_v2 = vld [vmem:[#allocation6 + $0x67c] ss:$36 sps:$4 sm:$0xff]   ;;  %1430 = vmatprep.subr.bf16.mxu0 %v3853_v1  ;;  %v3859_v5 = vld [vmem:[#allocation6 + $0x1b4] ss:$36 sps:$4 sm:$0xff]   ;;  %v3865_v9 = vld [vmem:[#allocation6 + $0x16c] ss:$36 sps:$4 sm:$0xff]  }
  0x3a   :  { %v3857_v3 = vld [vmem:[#allocation6 + $0x1f8] ss:$36 sps:$4 sm:$0xff]   ;;  %1473 = vmatprep.subr.bf16.mxu1 %v3855_v2  ;;  %v3863_v7 = vld [vmem:[#allocation6 + $0x1b0] ss:$36 sps:$4 sm:$0xff]   ;;  %v3869_v11 = vld [vmem:[#allocation6 + $0x168] ss:$36 sps:$4 sm:$0xff]  }
  0x3b   :  { %v3858_v4 = vld [vmem:[#allocation6 + $0x678] ss:$36 sps:$4 sm:$0xff]   ;;  %1431 = vmatpush1.bf16.msra.mxu0 %v3857_v3  ;;  %v3864_v8 = vld [vmem:[#allocation6 + $0x630] ss:$36 sps:$4 sm:$0xff]   ;;  %v3870_v12 = vld [vmem:[#allocation6 + $0x5e8] ss:$36 sps:$4 sm:$0xff]  }
  0x3c   :  { %1474 = vmatpush1.bf16.msra.mxu1 %v3858_v4  ;;  %v3861_v6 = vld [vmem:[#allocation6 + $0x634] ss:$36 sps:$4 sm:$0xff]   ;;  %1432 = vmatprep.subr.bf16.mxu0 %v3859_v5  ;;  %v3867_v10 = vld [vmem:[#allocation6 + $0x5ec] ss:$36 sps:$4 sm:$0xff]   ;;  %v3871_v13 = vld [vmem:[#allocation6 + $0x124] ss:$36 sps:$4 sm:$0xff]  }
  0x3d   :  { %1475 = vmatprep.subr.bf16.mxu1 %v3861_v6  ;;  %v3873_v14 = vld [vmem:[#allocation6 + $0x5a4] ss:$36 sps:$4 sm:$0xff]   ;;  %v3877_v17 = vld [vmem:[#allocation6 + $0xdc] ss:$36 sps:$4 sm:$0xff]   ;;  %v3883_v21 = vld [vmem:[#allocation6 + $0x94] ss:$36 sps:$4 sm:$0xff]  }
  0x3e   :  { %v3875_v15 = vld [vmem:[#allocation6 + $0x120] ss:$36 sps:$4 sm:$0xff]   ;;  %v3881_v19 = vld [vmem:[#allocation6 + $0xd8] ss:$36 sps:$4 sm:$0xff]   ;;  %v3887_v23 = vld [vmem:[#allocation6 + $0x90] ss:$36 sps:$4 sm:$0xff]  }
  0x3f   :  { %1433 = vmatpush1.bf16.msra.mxu0 %v3863_v7  ;;  %v3876_v16 = vld [vmem:[#allocation6 + $0x5a0] ss:$36 sps:$4 sm:$0xff]   ;;  %v3882_v20 = vld [vmem:[#allocation6 + $0x558] ss:$36 sps:$4 sm:$0xff]   ;;  %v3888_v24 = vld [vmem:[#allocation6 + $0x510] ss:$36 sps:$4 sm:$0xff]  }
  0x40   :  { %1476 = vmatpush1.bf16.msra.mxu1 %v3864_v8  ;;  %1434 = vmatprep.subr.bf16.mxu0 %v3865_v9  ;;  %v3879_v18 = vld [vmem:[#allocation6 + $0x55c] ss:$36 sps:$4 sm:$0xff]   ;;  %v3885_v22 = vld [vmem:[#allocation6 + $0x514] ss:$36 sps:$4 sm:$0xff]   ;;  %v3889_v25 = vld [vmem:[#allocation6 + $0x4c] ss:$36 sps:$4 sm:$0xff]  }
  0x41   :  { %1477 = vmatprep.subr.bf16.mxu1 %v3867_v10  ;;  %v3891_v26 = vld [vmem:[#allocation6 + $0x4cc] ss:$36 sps:$4 sm:$0xff]   ;;  %v3895_v29 = vld [vmem:[#allocation6 + $0x4] ss:$36 sps:$4 sm:$0xff]   ;;  %v82_v34 = vld [vmem:[#allocation3 + $0x28] sm:$0x3] }
  0x42   :  { %v3893_v27 = vld [vmem:[#allocation6 + $0x48] ss:$36 sps:$4 sm:$0xff]   ;;  %v3899_v31 = vld [vmem:[#allocation6] ss:$36 sps:$4 sm:$0xff]   ;;  %v3906_v39 = vld [vmem:[#allocation6 + $0x438] ss:$36 sps:$4 sm:$0xff]  }
  0x43   :  { %1435 = vmatpush1.bf16.msra.mxu0 %v3869_v11  ;;  %v3894_v28 = vld [vmem:[#allocation6 + $0x4c8] ss:$36 sps:$4 sm:$0xff]   ;;  %v3900_v32 = vld [vmem:[#allocation6 + $0x480] ss:$36 sps:$4 sm:$0xff]   ;;  %v3907_v40 = vld [vmem:[#allocation6 + $0x3f4] ss:$36 sps:$4 sm:$0xff]  }
  0x44   :  { %1478 = vmatpush1.bf16.msra.mxu1 %v3870_v12  ;;  %1436 = vmatprep.subr.bf16.mxu0 %v3871_v13  ;;  %v3897_v30 = vld [vmem:[#allocation6 + $0x484] ss:$36 sps:$4 sm:$0xff]   ;;  %v3901_v35 = vld [vmem:[#allocation6 + $0x43c] ss:$36 sps:$4 sm:$0xff]   ;;  %v3912_v43 = vld [vmem:[#allocation6 + $0x3f0] ss:$36 sps:$4 sm:$0xff]  }
  0x45   :  { %1479 = vmatprep.subr.bf16.mxu1 %v3873_v14  ;;  %v79_v33 = vld [vmem:[#allocation3 + $0x10] sm:$0xff]  ;;  %v3909_v42 = vld [vmem:[#allocation6 + $0x1b8] ss:$36 sps:$4 sm:$0xff]   ;;  %v3913_v44 = vld [vmem:[#allocation6 + $0x3ac] ss:$36 sps:$4 sm:$0xff]   ;;  %vm1868_vm1 = vcmask 523264  }
  0x46   :  { %v3905_v36 = vld [vmem:[#allocation6 + $0x204] ss:$36 sps:$4 sm:$0xff]   ;;  %v4480_v37 = vpack.c.bf16 %v82_v34, %v79_v33  ;;  %v3911_v41 = vld [vmem:[#allocation6 + $0x1bc] ss:$36 sps:$4 sm:$0xff]   ;;  %v3917_v45 = vld [vmem:[#allocation6 + $0x174] ss:$36 sps:$4 sm:$0xff]  }
  0x47   :  { %1437 = vmatpush1.bf16.msra.mxu0 %v3875_v15  ;;  %v3903_v38 = vld [vmem:[#allocation6 + $0x200] ss:$36 sps:$4 sm:$0xff]   ;;  %v3915_v46 = vld [vmem:[#allocation6 + $0x170] ss:$36 sps:$4 sm:$0xff]   ;;  %v3918_v47 = vld [vmem:[#allocation6 + $0x3a8] ss:$36 sps:$4 sm:$0xff]  }
  0x48   :  { %1480 = vmatpush1.bf16.msra.mxu1 %v3876_v16  ;;  %1438 = vmatprep.subr.bf16.mxu0 %v3877_v17  ;;  %v3919_v48 = vld [vmem:[#allocation6 + $0x364] ss:$36 sps:$4 sm:$0xff]   ;;  %v3923_v49 = vld [vmem:[#allocation6 + $0x12c] ss:$36 sps:$4 sm:$0xff]   ;;  %v78_v50 = vld [vmem:[#allocation3 + $0x8] sm:$0xff]  ;;  %vm1944_vm2 = vcmask 1044480  }
  0x49   :  { %1481 = vmatprep.subr.bf16.mxu1 %v3879_v18  ;;  %v81_v51 = vld [vmem:[#allocation3 + $0x20] sm:$0x3]  ;;  %v3921_v52 = vld [vmem:[#allocation6 + $0x128] ss:$36 sps:$4 sm:$0xff]   ;;  %v3924_v53 = vld [vmem:[#allocation6 + $0x360] ss:$36 sps:$4 sm:$0xff]  }
  0x4a   :  { %v4483_v54 = vpack.c.bf16 %v81_v51, %v78_v50  ;;  %v3925_v55 = vld [vmem:[#allocation6 + $0x31c] ss:$36 sps:$4 sm:$0xff]   ;;  %v3929_v56 = vld [vmem:[#allocation6 + $0xe4] ss:$36 sps:$4 sm:$0xff]   ;;  %v3931_v59 = vld [vmem:[#allocation6 + $0x2d4] ss:$36 sps:$4 sm:$0xff]  }
  0x4b   :  { %1439 = vmatpush1.bf16.msra.mxu0 %v3881_v19  ;;  %v3927_v57 = vld [vmem:[#allocation6 + $0xe0] ss:$36 sps:$4 sm:$0xff]   ;;  %v3930_v58 = vld [vmem:[#allocation6 + $0x318] ss:$36 sps:$4 sm:$0xff]   ;;  %v3936_v62 = vld [vmem:[#allocation6 + $0x2d0] ss:$36 sps:$4 sm:$0xff]  }
  0x4c   :  { %1482 = vmatpush1.bf16.msra.mxu1 %v3882_v20  ;;  %1440 = vmatprep.subr.bf16.mxu0 %v3883_v21  ;;  %v3935_v60 = vld [vmem:[#allocation6 + $0x9c] ss:$36 sps:$4 sm:$0xff]   ;;  %v3937_v63 = vld [vmem:[#allocation6 + $0x28c] ss:$36 sps:$4 sm:$0xff]   ;;  %v3941_v1 = vld [vmem:[#allocation6 + $0x54] ss:$36 sps:$4 sm:$0xff]  }
  0x4d   :  { %1483 = vmatprep.subr.bf16.mxu1 %v3885_v22  ;;  %1462 = vmatprep.mubr.bf16.mxu0 %v4483_v54  ;;  %v3933_v61 = vld [vmem:[#allocation6 + $0x98] ss:$36 sps:$4 sm:$0xff]   ;;  %v3939_v2 = vld [vmem:[#allocation6 + $0x50] ss:$36 sps:$4 sm:$0xff]   ;;  %v3942_v3 = vld [vmem:[#allocation6 + $0x288] ss:$36 sps:$4 sm:$0xff]  }
  0x4e   :  { %v3943_v4 = vld [vmem:[#allocation6 + $0x244] ss:$36 sps:$4 sm:$0xff]   ;;  %v3947_v5 = vld [vmem:[#allocation6 + $0xc] ss:$36 sps:$4 sm:$0xff]   ;;  %v3957_v15 = vld [vmem:[#allocation6 + $0x3fc] ss:$36 sps:$4 sm:$0xff]  }
  0x4f   :  { %1441 = vmatpush1.bf16.msra.mxu0 %v3887_v23  ;;  %v3945_v6 = vld [vmem:[#allocation6 + $0x8] ss:$36 sps:$4 sm:$0xff]   ;;  %v3948_v7 = vld [vmem:[#allocation6 + $0x240] ss:$36 sps:$4 sm:$0xff]   ;;  %v77_v8 = vld [vmem:[#allocation3] sm:$0xff]  ;;  %vm1916_vm3 = vcmask 80896  }
  0x50   :  { %1484 = vmatpush1.bf16.msra.mxu1 %v3888_v24  ;;  %1442 = vmatprep.subr.bf16.mxu0 %v3889_v25  ;;  %v80_v9 = vld [vmem:[#allocation3 + $0x18] sm:$0x3]  ;;  %v3949_v13 = vld [vmem:[#allocation6 + $0x440] ss:$36 sps:$4 sm:$0xff]   ;;  %v3955_v17 = vld [vmem:[#allocation6 + $0x3f8] ss:$36 sps:$4 sm:$0xff]  }
  0x51   :  { %1485 = vmatprep.subr.bf16.mxu1 %v3891_v26  ;;  %v3951_v10 = vld [vmem:[#allocation6 + $0x444] ss:$36 sps:$4 sm:$0xff]   ;;  %v4487_v12 = vpack.c.bf16 %v80_v9, %v77_v8  ;;  %v3960_v16 = vld [vmem:[#allocation6 + $0x63c] ss:$36 sps:$4 sm:$0xff]   ;;  %v3963_v19 = vld [vmem:[#allocation6 + $0x3b4] ss:$36 sps:$4 sm:$0xff]  }
  0x52   :  { %v3954_v11 = vld [vmem:[#allocation6 + $0x684] ss:$36 sps:$4 sm:$0xff]   ;;  %v3958_v18 = vld [vmem:[#allocation6 + $0x638] ss:$36 sps:$4 sm:$0xff]   ;;  %v3961_v21 = vld [vmem:[#allocation6 + $0x3b0] ss:$36 sps:$4 sm:$0xff]  }
  0x53   :  { %1443 = vmatpush1.bf16.msra.mxu0 %v3893_v27  ;;  %v3952_v14 = vld [vmem:[#allocation6 + $0x680] ss:$36 sps:$4 sm:$0xff]   ;;  %v3966_v20 = vld [vmem:[#allocation6 + $0x5f4] ss:$36 sps:$4 sm:$0xff]   ;;  %v3969_v23 = vld [vmem:[#allocation6 + $0x36c] ss:$36 sps:$4 sm:$0xff]  }
  0x54   :  { %1486 = vmatpush1.bf16.msra.mxu1 %v3894_v28  ;;  %1444 = vmatprep.subr.bf16.mxu0 %v3895_v29  ;;  %v3964_v22 = vld [vmem:[#allocation6 + $0x5f0] ss:$36 sps:$4 sm:$0xff]   ;;  %v3967_v25 = vld [vmem:[#allocation6 + $0x368] ss:$36 sps:$4 sm:$0xff]   ;;  %v3973_v29 = vld [vmem:[#allocation6 + $0x320] ss:$36 sps:$4 sm:$0xff]  }
  0x55   :  { %1487 = vmatprep.subr.bf16.mxu1 %v3897_v30  ;;  %v3972_v24 = vld [vmem:[#allocation6 + $0x5ac] ss:$36 sps:$4 sm:$0xff]   ;;  %v3975_v27 = vld [vmem:[#allocation6 + $0x324] ss:$36 sps:$4 sm:$0xff]   ;;  %v3979_v33 = vld [vmem:[#allocation6 + $0x2d8] ss:$36 sps:$4 sm:$0xff]  }
  0x56   :  { %v3970_v26 = vld [vmem:[#allocation6 + $0x5a8] ss:$36 sps:$4 sm:$0xff]   ;;  %v3976_v30 = vld [vmem:[#allocation6 + $0x560] ss:$36 sps:$4 sm:$0xff]   ;;  %v3982_v34 = vld [vmem:[#allocation6 + $0x518] ss:$36 sps:$4 sm:$0xff]  }
  0x57   :  { %1445 = vmatpush1.bf16.msra.mxu0 %v3899_v31  ;;  %v3978_v28 = vld [vmem:[#allocation6 + $0x564] ss:$36 sps:$4 sm:$0xff]   ;;  %v3981_v31 = vld [vmem:[#allocation6 + $0x2dc] ss:$36 sps:$4 sm:$0xff]   ;;  %vm1920_vm4 = vcmask 74752   ;;  %s4432_s2 = smov 64  }
  0x58   :  { %1488 = vmatpush1.bf16.msra.mxu1 %v3900_v32  ;;  %1446 = vmatprep.subr.bf16.mxu0 %v3901_v35  ;;  %v3984_v32 = vld [vmem:[#allocation6 + $0x51c] ss:$36 sps:$4 sm:$0xff]   ;;  %v3987_v35 = vld [vmem:[#allocation6 + $0x294] ss:$36 sps:$4 sm:$0xff]   ;;  %vm1990_vm5 = vcmask 517120   ;;  %vm2126_vm6 = vcmask 1048064  }
  0x59   :  { %1516 = vmatprep.subr.bf16.mxu1 %v3905_v36  ;;  %v3990_v36 = vld [vmem:[#allocation6 + $0x4d4] ss:$36 sps:$4 sm:$0xff]   ;;  %v4000_v50 = vld [vmem:[#allocation6 + $0x1c0] ss:$36 sps:$4 sm:$0xff]   ;;  %vm2128_vm7 = vcmask 1041920  }
  0x5a   :  { %v4030_v51 = vld [vmem:[#allocation6 + $0x640] ss:$36 sps:$4 sm:$0xff]   ;;  %v4015_v8 = vld [vmem:[#allocation6 + $0x58] ss:$36 sps:$4 sm:$0xff]  }
  0x5b   :  { %1506 = vmatmul.mubr.bf16.vlgmr.msra.gmra.mxu1 %v4480_v37  ;;  %1447 = vmatpush2.bf16.msra.mxu0 %v3906_v39  ;;  %v3988_v39 = vld [vmem:[#allocation6 + $0x4d0] ss:$36 sps:$4 sm:$0xff]   ;;  %v4060_v9 = vld [vmem:[#allocation6 + $0x4d8] ss:$36 sps:$4 sm:$0xff]  }
  0x5c   :  { %1517 = vmatpush1.bf16.msra.mxu1 %v3903_v38  ;;  %1448 = vmatprep.subr.bf16.mxu0 %v3907_v40  ;;  %v3985_v38 = vld [vmem:[#allocation6 + $0x290] ss:$36 sps:$4 sm:$0xff]  }
  0x5d   :  { %1518 = vmatprep.subr.bf16.mxu1 %v3911_v41  ;;  %1548 = vmatprep.mubr.bf16.mxu1 %v4483_v54  ;;  %v3993_v40 = vld [vmem:[#allocation6 + $0x24c] ss:$36 sps:$4 sm:$0xff]  }
  0x5e   :  { %v3996_v41 = vld [vmem:[#allocation6 + $0x48c] ss:$36 sps:$4 sm:$0xff]  }
  0x5f   :  { %1449 = vmatpush2.bf16.msra.mxu0 %v3912_v43  ;;  %v3994_v43 = vld [vmem:[#allocation6 + $0x488] ss:$36 sps:$4 sm:$0xff]  }
  0x60   :  { %1519 = vmatpush1.bf16.msra.mxu1 %v3909_v42  ;;  %1450 = vmatprep.subr.bf16.mxu0 %v3913_v44  ;;  %v3991_v42 = vld [vmem:[#allocation6 + $0x248] ss:$36 sps:$4 sm:$0xff]  }
  0x61   :  { %1520 = vmatprep.subr.bf16.mxu1 %v3917_v45  ;;  %v3999_v44 = vld [vmem:[#allocation6 + $0x20c] ss:$36 sps:$4 sm:$0xff]  }
  0x62   :  { %v4026_v45 = vld [vmem:[#allocation6 + $0x68c] ss:$36 sps:$4 sm:$0xff]  }
  0x63   :  { %1451 = vmatpush2.bf16.msra.mxu0 %v3918_v47  ;;  %v4024_v47 = vld [vmem:[#allocation6 + $0x688] ss:$36 sps:$4 sm:$0xff]  }
  0x64   :  { %1521 = vmatpush1.bf16.msra.mxu1 %v3915_v46  ;;  %1452 = vmatprep.subr.bf16.mxu0 %v3919_v48  ;;  %v3997_v46 = vld [vmem:[#allocation6 + $0x208] ss:$36 sps:$4 sm:$0xff]  }
  0x65   :  { %1522 = vmatprep.subr.bf16.mxu1 %v3923_v49  ;;  %v4002_v48 = vld [vmem:[#allocation6 + $0x1c4] ss:$36 sps:$4 sm:$0xff]  }
  0x66   :  { %v4032_v49 = vld [vmem:[#allocation6 + $0x644] ss:$36 sps:$4 sm:$0xff]  }
  0x67   :  { %1453 = vmatpush2.bf16.msra.mxu0 %v3924_v53  ;;  %v4038_v53 = vld [vmem:[#allocation6 + $0x5fc] ss:$36 sps:$4 sm:$0xff]  }
  0x68   :  { %1523 = vmatpush1.bf16.msra.mxu1 %v3921_v52  ;;  %1454 = vmatprep.subr.bf16.mxu0 %v3925_v55  ;;  %v4005_v52 = vld [vmem:[#allocation6 + $0x17c] ss:$36 sps:$4 sm:$0xff]  }
  0x69   :  { %1524 = vmatprep.subr.bf16.mxu1 %v3929_v56  ;;  %v4003_v55 = vld [vmem:[#allocation6 + $0x178] ss:$36 sps:$4 sm:$0xff]  }
  0x6a   :  { %v4036_v56 = vld [vmem:[#allocation6 + $0x5f8] ss:$36 sps:$4 sm:$0xff]  }
  0x6b   :  { %1455 = vmatpush2.bf16.msra.mxu0 %v3930_v58  ;;  %v4044_v58 = vld [vmem:[#allocation6 + $0x5b4] ss:$36 sps:$4 sm:$0xff]  }
  0x6c   :  { %1525 = vmatpush1.bf16.msra.mxu1 %v3927_v57  ;;  %1456 = vmatprep.subr.bf16.mxu0 %v3931_v59  ;;  %v4008_v57 = vld [vmem:[#allocation6 + $0x134] ss:$36 sps:$4 sm:$0xff]  }
  0x6d   :  { %1526 = vmatprep.subr.bf16.mxu1 %v3935_v60  ;;  %v4006_v59 = vld [vmem:[#allocation6 + $0x130] ss:$36 sps:$4 sm:$0xff]  }
  0x6e   :  { %v4042_v60 = vld [vmem:[#allocation6 + $0x5b0] ss:$36 sps:$4 sm:$0xff]  }
  0x6f   :  { %1457 = vmatpush2.bf16.msra.mxu0 %v3936_v62  ;;  %v4050_v62 = vld [vmem:[#allocation6 + $0x56c] ss:$36 sps:$4 sm:$0xff]  }
  0x70   :  { %1527 = vmatpush1.bf16.msra.mxu1 %v3933_v61  ;;  %1458 = vmatprep.subr.bf16.mxu0 %v3937_v63  ;;  %v4011_v61 = vld [vmem:[#allocation6 + $0xec] ss:$36 sps:$4 sm:$0xff]  }
  0x71   :  { %1528 = vmatprep.subr.bf16.mxu1 %v3941_v1  ;;  %v4009_v63 = vld [vmem:[#allocation6 + $0xe8] ss:$36 sps:$4 sm:$0xff]  }
  0x72   :  { %v4048_v1 = vld [vmem:[#allocation6 + $0x568] ss:$36 sps:$4 sm:$0xff]  }
  0x73   :  { %1459 = vmatpush2.bf16.msra.mxu0 %v3942_v3  ;;  %v4056_v3 = vld [vmem:[#allocation6 + $0x524] ss:$36 sps:$4 sm:$0xff]  }
  0x74   :  { %1529 = vmatpush1.bf16.msra.mxu1 %v3939_v2  ;;  %1460 = vmatprep.subr.bf16.mxu0 %v3943_v4  ;;  %v4014_v2 = vld [vmem:[#allocation6 + $0xa4] ss:$36 sps:$4 sm:$0xff]  }
  0x75   :  { %1530 = vmatprep.subr.bf16.mxu1 %v3947_v5  ;;  %v4012_v4 = vld [vmem:[#allocation6 + $0xa0] ss:$36 sps:$4 sm:$0xff]  }
  0x76   :  { %v4054_v5 = vld [vmem:[#allocation6 + $0x520] ss:$36 sps:$4 sm:$0xff]  }
  0x77   :  { %1461 = vmatpush2.bf16.msra.mxu0 %v3948_v7  ;;  %v4062_v7 = vld [vmem:[#allocation6 + $0x4dc] ss:$36 sps:$4 sm:$0xff]  }
  0x78   :  { %1531 = vmatpush1.bf16.msra.mxu1 %v3945_v6  ;;  %1559 = vmatprep.subr.bf16.mxu0 %v3954_v11  ;;  %v4017_v6 = vld [vmem:[#allocation6 + $0x5c] ss:$36 sps:$4 sm:$0xff]   ;;  %v4068_v11 = vld [vmem:[#allocation6 + $0x494] ss:$36 sps:$4 sm:$0xff]  }
  0x79   :  { %1532 = vmatprep.subr.bf16.mxu1 %v3951_v10  ;;  %v4020_v10 = vld [vmem:[#allocation6 + $0x14] ss:$36 sps:$4 sm:$0xff]  }
  0x7a   :  { %1463 = vmatmul.mubr.bf16.vlgmr.msra.gmra.mxu0 %v4487_v12 }
  0x7b   :  { %1560 = vmatpush1.bf16.msra.mxu0 %v3952_v14  ;;  %1591 = vmatprep.mubr.bf16.mxu0 %v4429_v0  ;;  %v4066_v14 = vld [vmem:[#allocation6 + $0x490] ss:$36 sps:$4 sm:$0xff]  }
  0x7c   :  { %1533 = vmatpush2.bf16.msra.mxu1 %v3949_v13  ;;  %1561 = vmatprep.subr.bf16.mxu0 %v3960_v16  ;;  %v4018_v13 = vld [vmem:[#allocation6 + $0x10] ss:$36 sps:$4 sm:$0xff]  }
  0x7d   :  { %1534 = vmatprep.subr.bf16.mxu1 %v3957_v15  ;;  %v4023_v15 = vld [vmem:[#allocation6 + $0x44c] ss:$36 sps:$4 sm:$0xff]   ;;  %v4071_v16 = vld [vmem:[#allocation6 + $0x214] ss:$36 sps:$4 sm:$0xff]  }
  0x7f   :  { %1562 = vmatpush1.bf16.msra.mxu0 %v3958_v18  ;;  %v4029_v18 = vld [vmem:[#allocation6 + $0x404] ss:$36 sps:$4 sm:$0xff]  }
  0x80   :  { %1535 = vmatpush2.bf16.msra.mxu1 %v3955_v17  ;;  %1563 = vmatprep.subr.bf16.mxu0 %v3966_v20  ;;  %v4021_v17 = vld [vmem:[#allocation6 + $0x448] ss:$36 sps:$4 sm:$0xff]  }
  0x81   :  { %1536 = vmatprep.subr.bf16.mxu1 %v3963_v19  ;;  %v4069_v19 = vld [vmem:[#allocation6 + $0x210] ss:$36 sps:$4 sm:$0xff]  }
  0x82   :  { %v4074_v20 = vld [vmem:[#allocation6 + $0x1cc] ss:$36 sps:$4 sm:$0xff]  }
  0x83   :  { %1564 = vmatpush1.bf16.msra.mxu0 %v3964_v22  ;;  %v4035_v22 = vld [vmem:[#allocation6 + $0x3bc] ss:$36 sps:$4 sm:$0xff]  }
  0x84   :  { %1537 = vmatpush2.bf16.msra.mxu1 %v3961_v21  ;;  %1565 = vmatprep.subr.bf16.mxu0 %v3972_v24  ;;  %v4027_v21 = vld [vmem:[#allocation6 + $0x400] ss:$36 sps:$4 sm:$0xff]  }
  0x85   :  { %1538 = vmatprep.subr.bf16.mxu1 %v3969_v23  ;;  %v4072_v23 = vld [vmem:[#allocation6 + $0x1c8] ss:$36 sps:$4 sm:$0xff]  }
  0x86   :  { %v4077_v24 = vld [vmem:[#allocation6 + $0x184] ss:$36 sps:$4 sm:$0xff]  }
  0x87   :  { %1566 = vmatpush1.bf16.msra.mxu0 %v3970_v26  ;;  %v4041_v26 = vld [vmem:[#allocation6 + $0x374] ss:$36 sps:$4 sm:$0xff]  }
  0x88   :  { %1539 = vmatpush2.bf16.msra.mxu1 %v3967_v25  ;;  %1567 = vmatprep.subr.bf16.mxu0 %v3978_v28  ;;  %v4033_v25 = vld [vmem:[#allocation6 + $0x3b8] ss:$36 sps:$4 sm:$0xff]  }
  0x89   :  { %1540 = vmatprep.subr.bf16.mxu1 %v3975_v27  ;;  %v4075_v27 = vld [vmem:[#allocation6 + $0x180] ss:$36 sps:$4 sm:$0xff]  }
  0x8a   :  { %v4080_v28 = vld [vmem:[#allocation6 + $0x13c] ss:$36 sps:$4 sm:$0xff]  }
  0x8b   :  { %1568 = vmatpush1.bf16.msra.mxu0 %v3976_v30  ;;  %v4078_v30 = vld [vmem:[#allocation6 + $0x138] ss:$36 sps:$4 sm:$0xff]  }
  0x8c   :  { %1541 = vmatpush2.bf16.msra.mxu1 %v3973_v29  ;;  %1569 = vmatprep.subr.bf16.mxu0 %v3984_v32  ;;  %v4039_v29 = vld [vmem:[#allocation6 + $0x370] ss:$36 sps:$4 sm:$0xff]  }
  0x8d   :  { %1542 = vmatprep.subr.bf16.mxu1 %v3981_v31  ;;  %v4047_v31 = vld [vmem:[#allocation6 + $0x32c] ss:$36 sps:$4 sm:$0xff]   ;;  %v4083_v32 = vld [vmem:[#allocation6 + $0xf4] ss:$36 sps:$4 sm:$0xff]  }
  0x8f   :  { %1570 = vmatpush1.bf16.msra.mxu0 %v3982_v34  ;;  %v4053_v34 = vld [vmem:[#allocation6 + $0x2e4] ss:$36 sps:$4 sm:$0xff]  }
  0x90   :  { %1543 = vmatpush2.bf16.msra.mxu1 %v3979_v33  ;;  %1571 = vmatprep.subr.bf16.mxu0 %v3990_v36  ;;  %v4045_v33 = vld [vmem:[#allocation6 + $0x328] ss:$36 sps:$4 sm:$0xff]  }
  0x91   :  { %1544 = vmatprep.subr.bf16.mxu1 %v3987_v35  ;;  %v4081_v35 = vld [vmem:[#allocation6 + $0xf0] ss:$36 sps:$4 sm:$0xff]  }
  0x92   :  { %v4086_v36 = vld [vmem:[#allocation6 + $0xac] ss:$36 sps:$4 sm:$0xff]  }
  0x93   :  { %1572 = vmatpush1.bf16.msra.mxu0 %v3988_v39  ;;  %v4059_v39 = vld [vmem:[#allocation6 + $0x29c] ss:$36 sps:$4 sm:$0xff]  }
  0x94   :  { %1545 = vmatpush2.bf16.msra.mxu1 %v3985_v38  ;;  %1573 = vmatprep.subr.bf16.mxu0 %v3996_v41  ;;  %v4051_v38 = vld [vmem:[#allocation6 + $0x2e0] ss:$36 sps:$4 sm:$0xff]  }
  0x95   :  { %1546 = vmatprep.subr.bf16.mxu1 %v3993_v40  ;;  %v4084_v40 = vld [vmem:[#allocation6 + $0xa8] ss:$36 sps:$4 sm:$0xff]  }
  0x96   :  { %v4089_v41 = vld [vmem:[#allocation6 + $0x64] ss:$36 sps:$4 sm:$0xff]  }
  0x97   :  { %1574 = vmatpush1.bf16.msra.mxu0 %v3994_v43  ;;  %v4087_v43 = vld [vmem:[#allocation6 + $0x60] ss:$36 sps:$4 sm:$0xff]  }
  0x98   :  { %1547 = vmatpush2.bf16.msra.mxu1 %v3991_v42  ;;  %1602 = vmatprep.subr.bf16.mxu0 %v3999_v44  ;;  %v4057_v42 = vld [vmem:[#allocation6 + $0x298] ss:$36 sps:$4 sm:$0xff]  }
  0x99   :  { %1645 = vmatprep.subr.bf16.mxu1 %v4026_v45  ;;  %v4065_v44 = vld [vmem:[#allocation6 + $0x254] ss:$36 sps:$4 sm:$0xff]   ;;  %v4092_v45 = vld [vmem:[#allocation6 + $0x1c] ss:$36 sps:$4 sm:$0xff]  }
  0x9a   :  { %1592 = vmatmul.mubr.bf16.vlgmr.msra.gmra.mxu0 %v4480_v37 }
  0x9b   :  { %1549 = vmatmul.mubr.bf16.vlgmr.msra.gmra.mxu1 %v4487_v12  ;;  %1603 = vmatpush1.bf16.msra.mxu0 %v3997_v46  ;;  %v4063_v46 = vld [vmem:[#allocation6 + $0x250] ss:$36 sps:$4 sm:$0xff]  }
  0x9c   :  { %1646 = vmatpush1.bf16.msra.mxu1 %v4024_v47  ;;  %1604 = vmatprep.subr.bf16.mxu0 %v4002_v48  ;;  %v4090_v47 = vld [vmem:[#allocation6 + $0x18] ss:$36 sps:$4 sm:$0xff]  }
  0x9d   :  { %1647 = vmatprep.subr.bf16.mxu1 %v4032_v49  ;;  %1634 = vmatprep.mubr.bf16.mxu0 %v4483_v54  ;;  %v4095_v48 = vld [vmem:[#allocation6 + $0x694] ss:$36 sps:$4 sm:$0xff]  }
  0x9e   :  { %1677 = vmatprep.mubr.bf16.mxu1 %v4429_v0  ;;  %v4098_v49 = vld [vmem:[#allocation6 + $0x454] ss:$36 sps:$4 sm:$0xff]  }
  0x9f   :  { %1605 = vmatpush1.bf16.msra.mxu0 %v4000_v50  ;;  %v4093_v50 = vld [vmem:[#allocation6 + $0x690] ss:$36 sps:$4 sm:$0xff]  }
  0xa0   :  { %1648 = vmatpush1.bf16.msra.mxu1 %v4030_v51  ;;  %1606 = vmatprep.subr.bf16.mxu0 %v4005_v52  ;;  %v4096_v51 = vld [vmem:[#allocation6 + $0x450] ss:$36 sps:$4 sm:$0xff]  }
  0xa1   :  { %1649 = vmatprep.subr.bf16.mxu1 %v4038_v53  ;;  %v4101_v52 = vld [vmem:[#allocation6 + $0x64c] ss:$36 sps:$4 sm:$0xff]  }
  0xa2   :  { %v4104_v53 = vld [vmem:[#allocation6 + $0x40c] ss:$36 sps:$4 sm:$0xff]  }
  0xa3   :  { %1607 = vmatpush1.bf16.msra.mxu0 %v4003_v55  ;;  %v4099_v55 = vld [vmem:[#allocation6 + $0x648] ss:$36 sps:$4 sm:$0xff]  }
  0xa4   :  { %1650 = vmatpush1.bf16.msra.mxu1 %v4036_v56  ;;  %1608 = vmatprep.subr.bf16.mxu0 %v4008_v57  ;;  %v4102_v56 = vld [vmem:[#allocation6 + $0x408] ss:$36 sps:$4 sm:$0xff]  }
  0xa5   :  { %1651 = vmatprep.subr.bf16.mxu1 %v4044_v58  ;;  %v4107_v57 = vld [vmem:[#allocation6 + $0x604] ss:$36 sps:$4 sm:$0xff]  }
  0xa6   :  { %v4110_v58 = vld [vmem:[#allocation6 + $0x3c4] ss:$36 sps:$4 sm:$0xff]  }
  0xa7   :  { %1609 = vmatpush1.bf16.msra.mxu0 %v4006_v59  ;;  %v4105_v59 = vld [vmem:[#allocation6 + $0x600] ss:$36 sps:$4 sm:$0xff]  }
  0xa8   :  { %1652 = vmatpush1.bf16.msra.mxu1 %v4042_v60  ;;  %1610 = vmatprep.subr.bf16.mxu0 %v4011_v61  ;;  %v4108_v60 = vld [vmem:[#allocation6 + $0x3c0] ss:$36 sps:$4 sm:$0xff]  }
  0xa9   :  { %1653 = vmatprep.subr.bf16.mxu1 %v4050_v62  ;;  %v4113_v61 = vld [vmem:[#allocation6 + $0x5bc] ss:$36 sps:$4 sm:$0xff]  }
  0xaa   :  { %v4116_v62 = vld [vmem:[#allocation6 + $0x37c] ss:$36 sps:$4 sm:$0xff]  }
  0xab   :  { %1611 = vmatpush1.bf16.msra.mxu0 %v4009_v63  ;;  %v4111_v63 = vld [vmem:[#allocation6 + $0x5b8] ss:$36 sps:$4 sm:$0xff]  }
  0xac   :  { %1654 = vmatpush1.bf16.msra.mxu1 %v4048_v1  ;;  %1612 = vmatprep.subr.bf16.mxu0 %v4014_v2  ;;  %v4114_v1 = vld [vmem:[#allocation6 + $0x378] ss:$36 sps:$4 sm:$0xff]  }
  0xad   :  { %1655 = vmatprep.subr.bf16.mxu1 %v4056_v3  ;;  %v4119_v2 = vld [vmem:[#allocation6 + $0x574] ss:$36 sps:$4 sm:$0xff]  }
  0xae   :  { %v4122_v3 = vld [vmem:[#allocation6 + $0x334] ss:$36 sps:$4 sm:$0xff]  }
  0xaf   :  { %1613 = vmatpush1.bf16.msra.mxu0 %v4012_v4  ;;  %v4117_v4 = vld [vmem:[#allocation6 + $0x570] ss:$36 sps:$4 sm:$0xff]  }
  0xb0   :  { %1656 = vmatpush1.bf16.msra.mxu1 %v4054_v5  ;;  %1614 = vmatprep.subr.bf16.mxu0 %v4017_v6  ;;  %v4120_v5 = vld [vmem:[#allocation6 + $0x330] ss:$36 sps:$4 sm:$0xff]  }
  0xb1   :  { %1657 = vmatprep.subr.bf16.mxu1 %v4062_v7  ;;  %v4125_v6 = vld [vmem:[#allocation6 + $0x52c] ss:$36 sps:$4 sm:$0xff]  }
  0xb2   :  { %v4128_v7 = vld [vmem:[#allocation6 + $0x2ec] ss:$36 sps:$4 sm:$0xff]  }
  0xb3   :  { %1615 = vmatpush1.bf16.msra.mxu0 %v4015_v8  ;;  %v4123_v8 = vld [vmem:[#allocation6 + $0x528] ss:$36 sps:$4 sm:$0xff]  }
  0xb4   :  { %1658 = vmatpush1.bf16.msra.mxu1 %v4060_v9  ;;  %1616 = vmatprep.subr.bf16.mxu0 %v4020_v10  ;;  %v4126_v9 = vld [vmem:[#allocation6 + $0x2e8] ss:$36 sps:$4 sm:$0xff]  }
  0xb5   :  { %1659 = vmatprep.subr.bf16.mxu1 %v4068_v11  ;;  %v4131_v10 = vld [vmem:[#allocation6 + $0x4e4] ss:$36 sps:$4 sm:$0xff]  }
  0xb6   :  { %v4134_v11 = vld [vmem:[#allocation6 + $0x2a4] ss:$36 sps:$4 sm:$0xff]  }
  0xb7   :  { %1617 = vmatpush1.bf16.msra.mxu0 %v4018_v13  ;;  %v4129_v13 = vld [vmem:[#allocation6 + $0x4e0] ss:$36 sps:$4 sm:$0xff]  }
  0xb8   :  { %1660 = vmatpush1.bf16.msra.mxu1 %v4066_v14  ;;  %1618 = vmatprep.subr.bf16.mxu0 %v4023_v15  ;;  %v4132_v14 = vld [vmem:[#allocation6 + $0x2a0] ss:$36 sps:$4 sm:$0xff]  }
  0xb9   :  { %1688 = vmatprep.subr.bf16.mxu1 %v4071_v16  ;;  %v4137_v15 = vld [vmem:[#allocation6 + $0x49c] ss:$36 sps:$4 sm:$0xff]  }
  0xba   :  { %v4140_v16 = vld [vmem:[#allocation6 + $0x25c] ss:$36 sps:$4 sm:$0xff]  }
  0xbb   :  { %1678 = vmatmul.mubr.bf16.vlgmr.msra.gmra.mxu1 %v4480_v37  ;;  %1619 = vmatpush2.bf16.msra.mxu0 %v4021_v17  ;;  %v4135_v17 = vld [vmem:[#allocation6 + $0x498] ss:$36 sps:$4 sm:$0xff]  }
  0xbc   :  { %1689 = vmatpush1.bf16.msra.mxu1 %v4069_v19  ;;  %1620 = vmatprep.subr.bf16.mxu0 %v4029_v18  ;;  %v4138_v18 = vld [vmem:[#allocation6 + $0x258] ss:$36 sps:$4 sm:$0xff]  }
  0xbd   :  { %1690 = vmatprep.subr.bf16.mxu1 %v4074_v20  ;;  %1720 = vmatprep.mubr.bf16.mxu1 %v4483_v54  ;;  %v4141_v19 = vld [vmem:[#allocation6 + $0x458] ss:$36 sps:$4 sm:$0xff]  }
  0xbe   :  { %v4142_v20 = vld [vmem:[#allocation6 + $0x218] ss:$36 sps:$4 sm:$0xff]  }
  0xbf   :  { %1621 = vmatpush2.bf16.msra.mxu0 %v4027_v21  ;;  %v4143_v21 = vld [vmem:[#allocation6 + $0x698] ss:$36 sps:$4 sm:$0xff]  }
  0xc0   :  { %1691 = vmatpush1.bf16.msra.mxu1 %v4072_v23  ;;  %1622 = vmatprep.subr.bf16.mxu0 %v4035_v22  ;;  %v4430_v22 = vmov 0.0   ;;  %v4144_v23 = vld [vmem:[#allocation6 + $0x410] ss:$36 sps:$4 sm:$0xff]  }
  0xc1   :  { %1692 = vmatprep.subr.bf16.mxu1 %v4077_v24  ;;  %v4145_v24 = vld [vmem:[#allocation6 + $0x1d0] ss:$36 sps:$4 sm:$0xff]  }
  0xc3   :  { %1623 = vmatpush2.bf16.msra.mxu0 %v4033_v25  ;;  %v4146_v25 = vld [vmem:[#allocation6 + $0x650] ss:$36 sps:$4 sm:$0xff]  }
  0xc4   :  { %1693 = vmatpush1.bf16.msra.mxu1 %v4075_v27  ;;  %1624 = vmatprep.subr.bf16.mxu0 %v4041_v26  ;;  %v4147_v26 = vld [vmem:[#allocation6 + $0x3c8] ss:$36 sps:$4 sm:$0xff]  }
  0xc5   :  { %1694 = vmatprep.subr.bf16.mxu1 %v4080_v28  ;;  %v4148_v27 = vld [vmem:[#allocation6 + $0x188] ss:$36 sps:$4 sm:$0xff]  }
  0xc6   :  { %v4149_v28 = vld [vmem:[#allocation6 + $0x608] ss:$36 sps:$4 sm:$0xff]  }
  0xc7   :  { %1625 = vmatpush2.bf16.msra.mxu0 %v4039_v29  ;;  %v4150_v29 = vld [vmem:[#allocation6 + $0x380] ss:$36 sps:$4 sm:$0xff]  }
  0xc8   :  { %1695 = vmatpush1.bf16.msra.mxu1 %v4078_v30  ;;  %1626 = vmatprep.subr.bf16.mxu0 %v4047_v31  ;;  %v4151_v30 = vld [vmem:[#allocation6 + $0x140] ss:$36 sps:$4 sm:$0xff]  }
  0xc9   :  { %1696 = vmatprep.subr.bf16.mxu1 %v4083_v32  ;;  %v4152_v31 = vld [vmem:[#allocation6 + $0x5c0] ss:$36 sps:$4 sm:$0xff]   ;;  %v4154_v32 = vld [vmem:[#allocation6 + $0xf8] ss:$36 sps:$4 sm:$0xff]  }
  0xcb   :  { %1627 = vmatpush2.bf16.msra.mxu0 %v4045_v33  ;;  %v4155_v33 = vld [vmem:[#allocation6 + $0x578] ss:$36 sps:$4 sm:$0xff]  }
  0xcc   :  { %1697 = vmatpush1.bf16.msra.mxu1 %v4081_v35  ;;  %1628 = vmatprep.subr.bf16.mxu0 %v4053_v34  ;;  %v4156_v34 = vld [vmem:[#allocation6 + $0x2f0] ss:$36 sps:$4 sm:$0xff]  }
  0xcd   :  { %1698 = vmatprep.subr.bf16.mxu1 %v4086_v36  ;;  %v4157_v35 = vld [vmem:[#allocation6 + $0xb0] ss:$36 sps:$4 sm:$0xff]  }
  0xce   :  { %v4158_v36 = vld [vmem:[#allocation6 + $0x530] ss:$36 sps:$4 sm:$0xff]  }
  0xcf   :  { %1629 = vmatpush2.bf16.msra.mxu0 %v4051_v38  ;;  %v4159_v38 = vld [vmem:[#allocation6 + $0x2a8] ss:$36 sps:$4 sm:$0xff]  }
  0xd0   :  { %1699 = vmatpush1.bf16.msra.mxu1 %v4084_v40  ;;  %1630 = vmatprep.subr.bf16.mxu0 %v4059_v39  ;;  %v4160_v39 = vld [vmem:[#allocation6 + $0x68] ss:$36 sps:$4 sm:$0xff]  }
  0xd1   :  { %1700 = vmatprep.subr.bf16.mxu1 %v4089_v41  ;;  %v4161_v40 = vld [vmem:[#allocation6 + $0x4e8] ss:$36 sps:$4 sm:$0xff]   ;;  %v4162_v41 = vld [vmem:[#allocation6 + $0x260] ss:$36 sps:$4 sm:$0xff]  }
  0xd3   :  { %1631 = vmatpush2.bf16.msra.mxu0 %v4057_v42  ;;  %v4163_v42 = vld [vmem:[#allocation6 + $0x20] ss:$36 sps:$4 sm:$0xff]  }
  0xd4   :  { %1701 = vmatpush1.bf16.msra.mxu1 %v4087_v43  ;;  %1632 = vmatprep.subr.bf16.mxu0 %v4065_v44  ;;  %v4164_v43 = vld [vmem:[#allocation6 + $0x4a0] ss:$36 sps:$4 sm:$0xff]  }
  0xd5   :  { %1702 = vmatprep.subr.bf16.mxu1 %v4092_v45 }
  0xd7   :  { %1633 = vmatpush2.bf16.msra.mxu0 %v4063_v46 }
  0xd8   :  { %1703 = vmatpush1.bf16.msra.mxu1 %v4090_v47  ;;  %1731 = vmatprep.subr.bf16.mxu0 %v4095_v48 }
  0xd9   :  { %1704 = vmatprep.subr.bf16.mxu1 %v4098_v49 }
  0xda   :  { %1635 = vmatmul.mubr.bf16.vlgmr.msra.gmra.mxu0 %v4487_v12 }
  0xdb   :  { %1732 = vmatpush1.bf16.msra.mxu0 %v4093_v50  ;;  %1763 = vmatprep.mubr.bf16.mxu0 %v4429_v0 }
  0xdc   :  { %1705 = vmatpush2.bf16.msra.mxu1 %v4096_v51  ;;  %1733 = vmatprep.subr.bf16.mxu0 %v4101_v52 }
  0xdd   :  { %1706 = vmatprep.subr.bf16.mxu1 %v4104_v53 }
  0xdf   :  { %1734 = vmatpush1.bf16.msra.mxu0 %v4099_v55 }
  0xe0   :  { %1707 = vmatpush2.bf16.msra.mxu1 %v4102_v56  ;;  %1735 = vmatprep.subr.bf16.mxu0 %v4107_v57 }
  0xe1   :  { %1708 = vmatprep.subr.bf16.mxu1 %v4110_v58 }
  0xe3   :  { %1736 = vmatpush1.bf16.msra.mxu0 %v4105_v59 }
  0xe4   :  { %1709 = vmatpush2.bf16.msra.mxu1 %v4108_v60  ;;  %1737 = vmatprep.subr.bf16.mxu0 %v4113_v61 }
  0xe5   :  { %1710 = vmatprep.subr.bf16.mxu1 %v4116_v62 }
  0xe7   :  { %1738 = vmatpush1.bf16.msra.mxu0 %v4111_v63 }
  0xe8   :  { %1711 = vmatpush2.bf16.msra.mxu1 %v4114_v1  ;;  %1739 = vmatprep.subr.bf16.mxu0 %v4119_v2 }
  0xe9   :  { %1712 = vmatprep.subr.bf16.mxu1 %v4122_v3 }
  0xeb   :  { %1740 = vmatpush1.bf16.msra.mxu0 %v4117_v4 }
  0xec   :  { %1713 = vmatpush2.bf16.msra.mxu1 %v4120_v5  ;;  %1741 = vmatprep.subr.bf16.mxu0 %v4125_v6 }
  0xed   :  { %1714 = vmatprep.subr.bf16.mxu1 %v4128_v7 }
  0xef   :  { %1742 = vmatpush1.bf16.msra.mxu0 %v4123_v8 }
  0xf0   :  { %1715 = vmatpush2.bf16.msra.mxu1 %v4126_v9  ;;  %1743 = vmatprep.subr.bf16.mxu0 %v4131_v10 }
  0xf1   :  { %1716 = vmatprep.subr.bf16.mxu1 %v4134_v11 }
  0xf3   :  { %1744 = vmatpush1.bf16.msra.mxu0 %v4129_v13 }
  0xf4   :  { %1717 = vmatpush2.bf16.msra.mxu1 %v4132_v14  ;;  %1745 = vmatprep.subr.bf16.mxu0 %v4137_v15 }
  0xf5   :  { %1718 = vmatprep.subr.bf16.mxu1 %v4140_v16 }
  0xf7   :  { %1746 = vmatpush1.bf16.msra.mxu0 %v4135_v17 }
  0xf8   :  { %1719 = vmatpush2.bf16.msra.mxu1 %v4138_v18  ;;  %3638 = vmatprep.subr.bf16.mxu0 %v4141_v19 }
  0xf9   :  { %3724 = vmatprep.subr.bf16.mxu1 %v4430_v22 }
  0xfa   :  { %1764 = vmatmul.mubr.bf16.vlgmr.msra.gmra.mxu0 %v4480_v37 }
  0xfb   :  { %1721 = vmatmul.mubr.bf16.vlgmr.msra.gmra.mxu1 %v4487_v12  ;;  %3639 = vmatpush3.bf16.msra.mxu0 %v4142_v20 }
  0xfc   :  { %3725 = vmatpush3.bf16.msra.mxu1 %v4143_v21  ;;  %3640 = vmatprep.subr.bf16.mxu0 %v4144_v23 }
  0xfd   :  { %3726 = vmatprep.subr.bf16.mxu1 %v4430_v22  ;;  %1806 = vmatprep.mubr.bf16.mxu0 %v4483_v54  ;;  %v4153_v54 = vld [vmem:[#allocation6 + $0x338] ss:$36 sps:$4 sm:$0xff]  }
  0xfe   :  { %3740 = vmatprep.mubr.msk.bf16.mxu1 %vm4431_vm0, %v4430_v22 }
  0xff   :  { %3641 = vmatpush3.bf16.msra.mxu0 %v4145_v24 }
 0x100   :  { %3727 = vmatpush3.bf16.msra.mxu1 %v4146_v25  ;;  %3642 = vmatprep.subr.bf16.mxu0 %v4147_v26 }
 0x101   :  { %3728 = vmatprep.subr.bf16.mxu1 %v4430_v22 }
 0x103   :  { %3643 = vmatpush3.bf16.msra.mxu0 %v4148_v27 }
 0x104   :  { %3729 = vmatpush3.bf16.msra.mxu1 %v4149_v28  ;;  %3644 = vmatprep.subr.bf16.mxu0 %v4150_v29 }
 0x105   :  { %3730 = vmatprep.subr.bf16.mxu1 %v4430_v22 }
 0x107   :  { %3645 = vmatpush3.bf16.msra.mxu0 %v4151_v30 }
 0x108   :  { %3731 = vmatpush3.bf16.msra.mxu1 %v4152_v31  ;;  %3646 = vmatprep.subr.bf16.mxu0 %v4153_v54 }
 0x109   :  { %3732 = vmatprep.subr.bf16.mxu1 %v4430_v22 }
 0x10b   :  { %3647 = vmatpush3.bf16.msra.mxu0 %v4154_v32 }
 0x10c   :  { %3733 = vmatpush3.bf16.msra.mxu1 %v4155_v33  ;;  %3648 = vmatprep.subr.bf16.mxu0 %v4156_v34 }
 0x10d   :  { %3734 = vmatprep.subr.bf16.mxu1 %v4430_v22 }
 0x10f   :  { %3649 = vmatpush3.bf16.msra.mxu0 %v4157_v35 }
 0x110   :  { %3735 = vmatpush3.bf16.msra.mxu1 %v4158_v36  ;;  %3650 = vmatprep.subr.bf16.mxu0 %v4159_v38 }
 0x111   :  { %3736 = vmatprep.subr.bf16.mxu1 %v4430_v22 }
 0x113   :  { %3651 = vmatpush3.bf16.msra.mxu0 %v4160_v39 }
 0x114   :  { %3737 = vmatpush3.bf16.msra.mxu1 %v4161_v40  ;;  %3652 = vmatprep.subr.bf16.mxu0 %v4162_v41 }
 0x115   :  { %3738 = vmatprep.subr.bf16.mxu1 %v4430_v22 }
 0x117   :  { %3653 = vmatpush3.bf16.msra.mxu0 %v4163_v42 }
 0x118   :  { %3739 = vmatpush3.bf16.msra.mxu1 %v4164_v43  ;;  %3768 = vmatprep.subr.bf16.mxu0 %v4430_v22 }
 0x119   :  { %3744 = vmatprep.subr.bf16.mxu1 %v4430_v22 }
 0x11a   :  { %1807 = vmatmul.mubr.bf16.vlgmr.msra.gmra.mxu0 %v4487_v12 }
 0x11b   :  { %3741 = vmatmul.mubr.bf16.vlgmr.msra.gmra.mxu1 %v4480_v37  ;;  %3770 = vmatprep.mubr.msk.bf16.mxu0 %vm4431_vm0, %v4430_v22  ;;  %v1507_v44 = vpop.f32.mrf.mxu1 }
 0x11c   :  { %3746 = vmatprep.mubr.msk.bf16.mxu1 %vm4431_vm0, %v4430_v22 }
 0x11d   :  { %v1509_v45 = vpop.f32.mrf.mxu1 }
 0x11f   :  { %v1511_v47 = vpop.f32.mrf.mxu1 }
 0x121   :  { %v1513_v51 = vpop.f32.mrf.mxu1 }
 0x13a   :  { %v1464_v46 = vpop.f32.mrf.mxu0 }
 0x13b   :  { %v1508_v7 = vadd.f32 %v1507_v44, %v1464_v46 }
 0x13c   :  { %v1466_v48 = vpop.f32.mrf.mxu0 }
 0x13d   :  { %v1510_v49 = vadd.f32 %v1509_v45, %v1466_v48 }
 0x13e   :  { %v1468_v50 = vpop.f32.mrf.mxu0 }
 0x13f   :  { %v1512_v6 = vadd.f32 %v1511_v47, %v1468_v50 }
 0x140   :  { %v1470_v52 = vpop.f32.mrf.mxu0 }
 0x141   :  { %v1514_v53 = vadd.f32 %v1513_v51, %v1470_v52  ;;  %v4529_v8 = vpack.c.bf16 %v1512_v6, %v1508_v7 }
 0x143   :  { %v4520_v55 = vpack.c.bf16 %v1514_v53, %v1510_v49 }
 0x15a   :  { %v1593_v37 = vpop.f32.mrf.mxu0 }
 0x15b   :  { %v1550_v12 = vpop.f32.mrf.mxu1 }
 0x15c   :  { %v1594_v56 = vadd.f32 %v1593_v37, %v1550_v12  ;;  %v1595_v58 = vpop.f32.mrf.mxu0  ;;  %v4555_v12 = vld [vmem:[#allocation9] sm:$0xff] }
 0x15d   :  { %v1552_v57 = vpop.f32.mrf.mxu1 }
 0x15e   :  { %v1597_v60 = vpop.f32.mrf.mxu0  ;;  %v1596_v1 = vadd.f32 %v1595_v58, %v1552_v57  ;;  %v4558_v58 = vld [vmem:[#allocation9 + $0x8] sm:$0x3] }
 0x15f   :  { %v1554_v59 = vpop.f32.mrf.mxu1 }
 0x160   :  { %v1598_v61 = vadd.f32 %v1597_v60, %v1554_v59  ;;  %v1599_v63 = vpop.f32.mrf.mxu0 }
 0x161   :  { %v1556_v62 = vpop.f32.mrf.mxu1 }
 0x162   :  { %v4522_v2 = vpack.c.bf16 %v1598_v61, %v1594_v56  ;;  %v1600_v3 = vadd.f32 %v1599_v63, %v1556_v62 }
 0x164   :  { %v4524_v4 = vpack.c.bf16 %v1600_v3, %v1596_v1 }
 0x166   :  { %v1873_v5 = vsel %vm1868_vm1, %v4524_v4, 0 }
 0x167   :  { %3745 = vmatpush3.bf16.xpose.msra.mxu1 %v1873_v5 }
 0x168   :  { %3750 = vmatprep.subr.bf16.mxu1 %v4430_v22 }
 0x16e   :  { %3747 = vmatmul.mubr.msk.bf16.vlgmr.msra.gmra.mxu1 %vm1868_vm1, %v4529_v8 }
 0x16f   :  { %3752 = vmatprep.mubr.msk.bf16.mxu1 %vm4431_vm0, %v4430_v22 }
 0x17b   :  { %v1679_v9 = vpop.f32.mrf.mxu1 }
 0x17d   :  { %v1681_v10 = vpop.f32.mrf.mxu1 }
 0x17f   :  { %v1683_v14 = vpop.f32.mrf.mxu1 }
 0x181   :  { %v1685_v18 = vpop.f32.mrf.mxu1 }
 0x19a   :  { %v1636_v11 = vpop.f32.mrf.mxu0 }
 0x19b   :  { %v1680_v15 = vadd.f32 %v1679_v9, %v1636_v11 }
 0x19c   :  { %v1638_v13 = vpop.f32.mrf.mxu0 }
 0x19d   :  { %v1682_v16 = vadd.f32 %v1681_v10, %v1638_v13 }
 0x19e   :  { %v1640_v17 = vpop.f32.mrf.mxu0 }
 0x19f   :  { %v1684_v19 = vadd.f32 %v1683_v14, %v1640_v17 }
 0x1a0   :  { %v1642_v20 = vpop.f32.mrf.mxu0 }
 0x1a1   :  { %v4535_v21 = vpack.c.bf16 %v1684_v19, %v1680_v15  ;;  %v1686_v23 = vadd.f32 %v1685_v18, %v1642_v20 }
 0x1a3   :  { %v2134_v24 = vsel %vm1868_vm1, %v4535_v21, 0  ;;  %v4539_v25 = vpack.c.bf16 %v1686_v23, %v1682_v16 }
 0x1a4   :  { %3769 = vmatpush3.bf16.xpose.msra.mxu0 %v2134_v24 }
 0x1a5   :  { %3780 = vmatprep.subr.bf16.mxu0 %v4430_v22 }
 0x1ab   :  { %3771 = vmatmul.mubr.msk.bf16.vlgmr.msra.gmra.mxu0 %vm1868_vm1, %v4520_v55 }
 0x1ac   :  { %3782 = vmatprep.mubr.msk.bf16.mxu0 %vm4431_vm0, %v4430_v22 }
 0x1ba   :  { %v1765_v27 = vpop.f32.mrf.mxu0 }
 0x1bb   :  { %v1722_v26 = vpop.f32.mrf.mxu1 }
 0x1bc   :  { %v1767_v29 = vpop.f32.mrf.mxu0  ;;  %v1766_v30 = vadd.f32 %v1765_v27, %v1722_v26 }
 0x1bd   :  { %v1724_v28 = vpop.f32.mrf.mxu1 }
 0x1be   :  { %v1768_v31 = vadd.f32 %v1767_v29, %v1724_v28  ;;  %v1769_v32 = vpop.f32.mrf.mxu0  ;;  %v2389_v29 = vsel %vm1868_vm1, %v4539_v25, 0 }
 0x1bf   :  { %v1726_v54 = vpop.f32.mrf.mxu1 }
 0x1c0   :  { %v1770_v33 = vadd.f32 %v1769_v32, %v1726_v54  ;;  %v1771_v35 = vpop.f32.mrf.mxu0 }
 0x1c1   :  { %v1728_v34 = vpop.f32.mrf.mxu1 }
 0x1c2   :  { %v4546_v36 = vpack.c.bf16 %v1770_v33, %v1766_v30  ;;  %v1772_v38 = vadd.f32 %v1771_v35, %v1728_v34 }
 0x1c4   :  { %v4548_v39 = vpack.c.bf16 %v1772_v38, %v1768_v31  ;;  %v1946_v40 = vsel %vm1944_vm2, %v4546_v36, 0 }
 0x1c5   :  { %3751 = vmatpush3.bf16.msra.mxu1 %v1946_v40 }
 0x1c6   :  { %3756 = vmatprep.subr.bf16.mxu1 %v4430_v22 }
 0x1da   :  { %v3654_v41 = vpop.f32.mrf.mxu0 }
 0x1db   :  { %v1849_v42 = vpop.f32.mrf.mxu1 }
 0x1dc   :  { %v3655_v43 = vpop.f32.mrf.mxu0 }
 0x1dd   :  { %v3742_v44 = vpop.f32.mrf.mxu1  ;;  %v3656_v45 = vadd.f32 %v3655_v43, %v3654_v41 }
 0x1de   :  { %v3657_v46 = vpop.f32.mrf.mxu0 }
 0x1df   :  { %v1852_v47 = vpop.f32.mrf.mxu1  ;;  %v1850_v48 = vadd.f32 %v3656_v45, %v1849_v42 }
 0x1e0   :  { %v3658_v49 = vpop.f32.mrf.mxu0 }
 0x1e1   :  { %v3743_v50 = vpop.f32.mrf.mxu1  ;;  %v3659_v51 = vadd.f32 %v3658_v49, %v3657_v46 }
 0x1e3   :  { %v1853_v52 = vadd.f32 %v3659_v51, %v1852_v47 }
 0x1e5   :  { %v4553_v53 = vpack.c.bf16 %v1853_v52, %v1850_v48 }
 0x22e   :  { %v1909_v37 = vpop.f32.mrf.mxu1 }
 0x22f   :  { %v1910_v56 = vadd.f32 %v1909_v37, %v4555_v12 }
 0x230   :  { %v3748_v57 = vpop.f32.mrf.mxu1 }
 0x231   :  { %v1917_v59 = vsel %vm1916_vm3, %v1910_v56, -inf }
 0x232   :  { %1918 = vmax.xlane.f32.xlu0 %v1917_v59  ;;  %v1912_v60 = vpop.f32.mrf.mxu1 }
 0x233   :  { %v1913_v61 = vadd.f32 %v1912_v60, %v4558_v58 }
 0x234   :  { %v3749_v62 = vpop.f32.mrf.mxu1 }
 0x235   :  { %v1921_v63 = vsel %vm1920_vm4, %v1913_v61, -inf }
 0x236   :  { %1922 = vmax.xlane.f32.xlu0 %v1921_v63 }
 0x24c   :  { %1996 = vrot.lane.b32.xlu0 %v4524_v4, %s4432_s2 }
 0x250   :  { %2508 = vrot.lane.b32.xlu0 %v4539_v25, %s4432_s2 }
 0x26b   :  { %v4567_v1 = vpop.f32.mrf.mxu0 }
 0x26c   :  { %v2171_v49 = vadd.f32 %v4567_v1, %v4555_v12 }
 0x26d   :  { %v3772_v3 = vpop.f32.mrf.mxu0 }
 0x26e   :  { %v2177_v62 = vsel %vm1916_vm3, %v2171_v49, -inf }
 0x26f   :  { %v4569_v5 = vpop.f32.mrf.mxu0 }
 0x270   :  { %v2174_v59 = vadd.f32 %v4569_v5, %v4558_v58 }
 0x271   :  { %v3773_v6 = vpop.f32.mrf.mxu0 }
 0x2bb   :  { %v1919_v7 = vpop.xlane.xlu0 %1918 }
 0x2bc   :  { %v1924_v9 = vsub.f32 %v1910_v56, %v1919_v7  ;;  %v2180_v7 = vsel %vm1920_vm4, %v2174_v59, -inf }
 0x2be   :  { %v1926_v10 = vmul.f32 1.442695, %v1924_v9 }
 0x2bf   :  { %v1923_v11 = vpop.xlane.xlu0 %1922 }
 0x2c0   :  { %4261 = vpow2.f32 %v1926_v10  ;;  %v1925_v13 = vsub.f32 %v1913_v61, %v1923_v11 }
 0x2c2   :  { %v1928_v14 = vmul.f32 1.442695, %v1925_v13 }
 0x2c3   :  { %v1997_v28 = vpop.permute.xlu0 %1996 }
 0x2c4   :  { %4263 = vpow2.f32 %v1928_v14  ;;  %v2002_v31 = vsel %vm1868_vm1, %v1997_v28, 0 }
 0x2c7   :  { %v2509_v54 = vpop.permute.xlu0 %2508 }
 0x2c8   :  { %v2514_v25 = vsel %vm1868_vm1, %v2509_v54, 0 }
 0x2cd   :  { %v4262_v15 = vpop.eup %4261 }
 0x2ce   :  { %v1930_v4 = vsel %vm1916_vm3, %v4262_v15, 0.0 }
 0x2cf   :  { %1931 = vadd.xlane.f32.xlu1 %v1930_v4 }
 0x2d1   :  { %v4264_v16 = vpop.eup %4263 }
 0x2d2   :  { %v1933_v17 = vsel %vm1920_vm4, %v4264_v16, 0.0 }
 0x2d3   :  { %1934 = vadd.xlane.f32.xlu1 %v1933_v17 }
 0x2e4   :  { %1993 = vrot.lane.b32.xlu1 %v4529_v8, %s4432_s2 }
 0x2e8   :  { %2253 = vrot.lane.b32.xlu1 %v4535_v21, %s4432_s2 }
 0x2ec   :  { %2250 = vrot.lane.b32.xlu1 %v4520_v55, %s4432_s2 }
 0x2f0   :  { %2505 = vrot.lane.b32.xlu1 %v4522_v2, %s4432_s2 }
 0x358   :  { %v1932_v18 = vpop.xlane.xlu1 %1931 }
 0x359   :  { %4265 = vrcp.f32 %v1932_v18 }
 0x35c   :  { %v1935_v19 = vpop.xlane.xlu1 %1934 }
 0x35d   :  { %4267 = vrcp.f32 %v1935_v19 }
 0x360   :  { %v1994_v20 = vpop.permute.xlu1 %1993 }
 0x364   :  { %v2254_v23 = vpop.permute.xlu1 %2253 }
 0x365   :  { %v2259_v24 = vsel %vm1868_vm1, %v2254_v23, 0 }
 0x366   :  { %3781 = vmatpush3.bf16.xpose.msra.mxu0 %v2259_v24  ;;  %v4266_v8 = vpop.eup %4265 }
 0x367   :  { %3792 = vmatprep.subr.bf16.mxu0 %v4430_v22  ;;  %v1938_v21 = vmul.f32 %v4266_v8, %v4262_v15 }
 0x368   :  { %v2251_v55 = vpop.permute.xlu1 %2250 }
 0x36a   :  { %v4268_v26 = vpop.eup %4267 }
 0x36b   :  { %v1939_v27 = vmul.f32 %v4268_v26, %v4264_v16 }
 0x36c   :  { %v2506_v32 = vpop.permute.xlu1 %2505 }
 0x36d   :  { %3783 = vmatmul.mubr.msk.bf16.vlgmr.msra.gmra.mxu0 %vm1868_vm1, %v2251_v55  ;;  %v1940_v30 = vpack.c.bf16 %v1939_v27, %v1938_v21 }
 0x36e   :  { %3793 = vmatpush3.bf16.xpose.msra.mxu0 %v2389_v29  ;;  %3794 = vmatprep.mubr.msk.bf16.mxu0 %vm4431_vm0, %v4430_v22 }
 0x36f   :  { %3753 = vmatmul.mubr.msk.bf16.vlgmr.msra.gmra.mxu1 %vm1916_vm3, %v1940_v30  ;;  %3804 = vmatprep.subr.bf16.mxu0 %v4430_v22 }
 0x370   :  { %3757 = vmatpush3.bf16.xpose.msra.mxu1 %v2002_v31  ;;  %3758 = vmatprep.mubr.msk.bf16.mxu1 %vm4431_vm0, %v4430_v22 }
 0x371   :  { %3762 = vmatprep.subr.bf16.mxu1 %v4430_v22 }
 0x375   :  { %3795 = vmatmul.mubr.msk.bf16.vlgmr.msra.gmra.mxu0 %vm1868_vm1, %v4522_v2 }
 0x376   :  { %3805 = vmatpush3.bf16.xpose.msra.mxu0 %v2514_v25  ;;  %3806 = vmatprep.mubr.msk.bf16.mxu0 %vm4431_vm0, %v4430_v22 }
 0x377   :  { %3759 = vmatmul.mubr.msk.bf16.vlgmr.msra.gmra.mxu1 %vm1868_vm1, %v1994_v20 }
 0x378   :  { %3764 = vmatprep.mubr.msk.bf16.mxu1 %vm4431_vm0, %v4430_v22 }
 0x37d   :  { %3807 = vmatmul.mubr.msk.bf16.vlgmr.msra.gmra.mxu0 %vm1868_vm1, %v2506_v32 }
 0x42d   :  { %v2295_v33 = vpop.f32.mrf.mxu0 }
 0x42e   :  { %v2296_v3 = vadd.f32 %v2295_v33, %v4555_v12 }
 0x42f   :  { %v1982_v34 = vpop.f32.mrf.mxu1  ;;  %v3784_v35 = vpop.f32.mrf.mxu0 }
 0x430   :  { %1989 = vst.msk [vmem:[#allocation2] sm:$0xff] %vm1868_vm1, %v1982_v34  ;;  %v2302_v13 = vsel %vm1916_vm3, %v2296_v3, -inf }
 0x431   :  { %v3754_v38 = vpop.f32.mrf.mxu1  ;;  %v2298_v40 = vpop.f32.mrf.mxu0 }
 0x432   :  { %v2299_v60 = vadd.f32 %v2298_v40, %v4558_v58 }
 0x433   :  { %v1985_v2 = vpop.f32.mrf.mxu1  ;;  %v3785_v41 = vpop.f32.mrf.mxu0 }
 0x434   :  { %1991 = vst.msk [vmem:[#allocation2 + $0x18] sm:$0x3] %vm1990_vm5, %v1985_v2  ;;  %v2305_v9 = vsel %vm1920_vm4, %v2299_v60, -inf }
 0x435   :  { %v3755_v42 = vpop.f32.mrf.mxu1  ;;  %v2425_v43 = vpop.f32.mrf.mxu0 }
 0x436   :  { %v2426_v10 = vadd.f32 %v2425_v43, %v4555_v12 }
 0x437   :  { %v2038_v44 = vpop.f32.mrf.mxu1  ;;  %v3796_v45 = vpop.f32.mrf.mxu0 }
 0x438   :  { %v4606_v46 = vadd.f32 %v2038_v44, %v4555_v12  ;;  %v2432_v4 = vsel %vm1916_vm3, %v2426_v10, -inf }
 0x439   :  { %v3760_v47 = vpop.f32.mrf.mxu1  ;;  %v2428_v48 = vpop.f32.mrf.mxu0 }
 0x43a   :  { %v2045_v50 = vsel %vm1916_vm3, %v4606_v46, -inf  ;;  %v2429_v6 = vadd.f32 %v2428_v48, %v4558_v58 }
 0x43b   :  { %2046 = vmax.xlane.f32.xlu0 %v2045_v50  ;;  %v2041_v51 = vpop.f32.mrf.mxu1  ;;  %v3797_v52 = vpop.f32.mrf.mxu0 }
 0x43c   :  { %v2042_v37 = vadd.f32 %v2041_v51, %v4558_v58  ;;  %v2435_v14 = vsel %vm1920_vm4, %v2429_v6, -inf }
 0x43d   :  { %v3761_v56 = vpop.f32.mrf.mxu1  ;;  %v2550_v57 = vpop.f32.mrf.mxu0 }
 0x43e   :  { %v2048_v61 = vsel %vm1920_vm4, %v2042_v37, -inf  ;;  %v2551_v15 = vadd.f32 %v2550_v57, %v4555_v12 }
 0x43f   :  { %2049 = vmax.xlane.f32.xlu1 %v2048_v61  ;;  %2178 = vmax.xlane.f32.xlu0 %v2177_v62  ;;  %v3808_v63 = vpop.f32.mrf.mxu0 }
 0x440   :  { %v2557_v17 = vsel %vm1916_vm3, %v2551_v15, -inf }
 0x441   :  { %v2553_v1 = vpop.f32.mrf.mxu0 }
 0x442   :  { %v2554_v11 = vadd.f32 %v2553_v1, %v4558_v58 }
 0x443   :  { %2181 = vmax.xlane.f32.xlu0 %v2180_v7  ;;  %2306 = vmax.xlane.f32.xlu1 %v2305_v9  ;;  %v3809_v5 = vpop.f32.mrf.mxu0 }
 0x444   :  { %v2560_v16 = vsel %vm1920_vm4, %v2554_v11, -inf }
 0x447   :  { %2303 = vmax.xlane.f32.xlu0 %v2302_v13  ;;  %2436 = vmax.xlane.f32.xlu1 %v2435_v14 }
 0x44b   :  { %2433 = vmax.xlane.f32.xlu0 %v2432_v4  ;;  %2561 = vmax.xlane.f32.xlu1 %v2560_v16 }
 0x44f   :  { %2558 = vmax.xlane.f32.xlu0 %v2557_v17 }
 0x4c4   :  { %v2047_v18 = vpop.xlane.xlu0 %2046 }
 0x4c5   :  { %v2051_v31 = vsub.f32 %v4606_v46, %v2047_v18 }
 0x4c7   :  { %v2053_v35 = vmul.f32 1.442695, %v2051_v31 }
 0x4c8   :  { %v2050_v19 = vpop.xlane.xlu1 %2049  ;;  %v2179_v58 = vpop.xlane.xlu0 %2178 }
 0x4c9   :  { %v2183_v20 = vsub.f32 %v2171_v49, %v2179_v58  ;;  %v2052_v54 = vsub.f32 %v2042_v37, %v2050_v19 }
 0x4cb   :  { %v2185_v23 = vmul.f32 1.442695, %v2183_v20  ;;  %v2055_v38 = vmul.f32 1.442695, %v2052_v54 }
 0x4cc   :  { %v2182_v24 = vpop.xlane.xlu0 %2181  ;;  %v2307_v8 = vpop.xlane.xlu1 %2306 }
 0x4cd   :  { %v2184_v26 = vsub.f32 %v2174_v59, %v2182_v24  ;;  %v2309_v21 = vsub.f32 %v2299_v60, %v2307_v8  ;;  %4269 = vpow2.f32 %v2185_v23 }
 0x4cf   :  { %v2187_v12 = vmul.f32 1.442695, %v2184_v26  ;;  %v2312_v27 = vmul.f32 1.442695, %v2309_v21  ;;  %v2204_v21 = vsel %vm1944_vm2, %v4548_v39, 0 }
 0x4d0   :  { %v2304_v28 = vpop.xlane.xlu0 %2303  ;;  %v2437_v55 = vpop.xlane.xlu1 %2436 }
 0x4d1   :  { %4271 = vpow2.f32 %v2187_v12  ;;  %v2308_v29 = vsub.f32 %v2296_v3, %v2304_v28  ;;  %v2439_v30 = vsub.f32 %v2429_v6, %v2437_v55 }
 0x4d2   :  { %4273 = vpow2.f32 %v2312_v27 }
 0x4d3   :  { %v2310_v25 = vmul.f32 1.442695, %v2308_v29  ;;  %v2442_v32 = vmul.f32 1.442695, %v2439_v30 }
 0x4d4   :  { %v2434_v33 = vpop.xlane.xlu0 %2433  ;;  %v2562_v2 = vpop.xlane.xlu1 %2561 }
 0x4d5   :  { %4275 = vpow2.f32 %v2310_v25  ;;  %v2438_v34 = vsub.f32 %v2426_v10, %v2434_v33  ;;  %v2564_v44 = vsub.f32 %v2554_v11, %v2562_v2 }
 0x4d6   :  { %4277 = vpow2.f32 %v2442_v32 }
 0x4d7   :  { %v2440_v40 = vmul.f32 1.442695, %v2438_v34  ;;  %v2567_v48 = vmul.f32 1.442695, %v2564_v44 }
 0x4d8   :  { %v2559_v41 = vpop.xlane.xlu0 %2558 }
 0x4d9   :  { %4279 = vpow2.f32 %v2440_v40  ;;  %v2563_v42 = vsub.f32 %v2551_v15, %v2559_v41 }
 0x4da   :  { %4281 = vpow2.f32 %v2053_v35  ;;  %v4631_v43 = vpop.eup %4269  ;;  %v2459_v35 = vsel %vm1944_vm2, %v4553_v53, 0 }
 0x4db   :  { %4283 = vpow2.f32 %v2055_v38  ;;  %v2565_v45 = vmul.f32 1.442695, %v2563_v42  ;;  %v2189_v46 = vsel %vm1916_vm3, %v4631_v43, 0.0 }
 0x4dc   :  { %2190 = vadd.xlane.f32.xlu0 %v2189_v46 }
 0x4dd   :  { %4285 = vpow2.f32 %v2565_v45 }
 0x4de   :  { %v4635_v47 = vpop.eup %4271  ;;  %4287 = vpow2.f32 %v2567_v48  ;;  %v4167_v48 = vld [vmem:[#allocation8 + $0xac] ss:$12 sps:$4 sm:$0xff]  }
 0x4df   :  { %v2192_v49 = vsel %vm1920_vm4, %v4635_v47, 0.0  ;;  %v4639_v50 = vpop.eup %4273  ;;  %3145 = vmatprep.subr.bf16.mxu0 %v4167_v48 }
 0x4e0   :  { %2193 = vadd.xlane.f32.xlu1 %v2192_v49  ;;  %v2317_v37 = vsel %vm1920_vm4, %v4639_v50, 0.0  ;;  %v4170_v49 = vld [vmem:[#allocation8 + $0x94] ss:$12 sps:$4 sm:$0xff]  }
 0x4e2   :  { %v4641_v51 = vpop.eup %4275 }
 0x4e3   :  { %v2314_v52 = vsel %vm1916_vm3, %v4641_v51, 0.0  ;;  %v4647_v56 = vpop.eup %4277 }
 0x4e4   :  { %2315 = vadd.xlane.f32.xlu0 %v2314_v52  ;;  %2318 = vadd.xlane.f32.xlu1 %v2317_v37  ;;  %v2447_v61 = vsel %vm1920_vm4, %v4647_v56, 0.0  ;;  %v4186_v52 = vld [vmem:[#allocation8 + $0x228] ss:$12 sps:$4 sm:$0xff]   ;;  %v4188_v37 = vld [vmem:[#allocation8 + $0x22c] ss:$12 sps:$4 sm:$0xff]  }
 0x4e6   :  { %v4649_v57 = vpop.eup %4279 }
 0x4e7   :  { %v4282_v59 = vpop.eup %4281  ;;  %v2444_v60 = vsel %vm1916_vm3, %v4649_v57, 0.0 }
 0x4e8   :  { %v4284_v62 = vpop.eup %4283  ;;  %2445 = vadd.xlane.f32.xlu0 %v2444_v60  ;;  %2448 = vadd.xlane.f32.xlu1 %v2447_v61  ;;  %v2057_v63 = vsel %vm1916_vm3, %v4282_v59, 0.0  ;;  %v4192_v60 = vld [vmem:[#allocation8 + $0x210] ss:$12 sps:$4 sm:$0xff]   ;;  %v4174_v61 = vld [vmem:[#allocation8 + $0x60] ss:$12 sps:$4 sm:$0xff]  }
 0x4e9   :  { %v2060_v1 = vsel %vm1920_vm4, %v4284_v62, 0.0 }
 0x4ea   :  { %v4657_v3 = vpop.eup %4285 }
 0x4eb   :  { %v2569_v6 = vsel %vm1916_vm3, %v4657_v3, 0.0  ;;  %v4661_v7 = vpop.eup %4287 }
 0x4ec   :  { %2058 = vadd.xlane.f32.xlu0 %v2057_v63  ;;  %2061 = vadd.xlane.f32.xlu1 %v2060_v1  ;;  %v2572_v9 = vsel %vm1920_vm4, %v4661_v7, 0.0  ;;  %v4198_v63 = vld [vmem:[#allocation8 + $0x1f8] ss:$12 sps:$4 sm:$0xff]  }
 0x4ed   :  { %v4206_v1 = vld [vmem:[#allocation8 + $0x1e4] ss:$12 sps:$4 sm:$0xff]  }
 0x4f0   :  { %2570 = vadd.xlane.f32.xlu1 %v2569_v6  ;;  %v4182_v6 = vld [vmem:[#allocation8 + $0x34] ss:$12 sps:$4 sm:$0xff]  }
 0x4f4   :  { %2573 = vadd.xlane.f32.xlu1 %v2572_v9  ;;  %v4212_v9 = vld [vmem:[#allocation8 + $0x1cc] ss:$12 sps:$4 sm:$0xff]  }
 0x502   :  { %2069 = vrot.lane.b32.xlu0 %v4546_v36, %s4432_s2 }
 0x505   :  { %2326 = vrot.lane.b32.xlu1 %v4548_v39, %s4432_s2 }
 0x506   :  { %2581 = vrot.lane.b32.xlu0 %v4553_v53, %s4432_s2 }
 0x565   :  { %v2191_v5 = vpop.xlane.xlu0 %2190 }
 0x569   :  { %v2194_v10 = vpop.xlane.xlu1 %2193 }
 0x56d   :  { %v2316_v11 = vpop.xlane.xlu0 %2315  ;;  %v2319_v13 = vpop.xlane.xlu1 %2318 }
 0x571   :  { %v2446_v14 = vpop.xlane.xlu0 %2445  ;;  %v2449_v15 = vpop.xlane.xlu1 %2448 }
 0x575   :  { %v2059_v4 = vpop.xlane.xlu0 %2058  ;;  %v2062_v16 = vpop.xlane.xlu1 %2061 }
 0x576   :  { %4289 = vrcp.f32 %v2059_v4  ;;  %v4197_v4 = vld [vmem:[#allocation8 + $0x16c] ss:$12 sps:$4 sm:$0xff]  }
 0x577   :  { %4291 = vrcp.f32 %v2062_v16  ;;  %v4195_v16 = vld [vmem:[#allocation8 + $0x168] ss:$12 sps:$4 sm:$0xff]  }
 0x578   :  { %4293 = vrcp.f32 %v2194_v10  ;;  %v4185_v10 = vld [vmem:[#allocation8 + $0x1c] ss:$12 sps:$4 sm:$0xff]  }
 0x579   :  { %v2070_v17 = vpop.permute.xlu0 %2069  ;;  %4295 = vrcp.f32 %v2191_v5  ;;  %v2571_v36 = vpop.xlane.xlu1 %2570  ;;  %v4180_v5 = vld [vmem:[#allocation8 + $0x30] ss:$12 sps:$4 sm:$0xff]  }
 0x57a   :  { %v2075_v18 = vsel %vm1944_vm2, %v2070_v17, 0  ;;  %4297 = vrcp.f32 %v2316_v11  ;;  %v4210_v11 = vld [vmem:[#allocation8 + $0x1c8] ss:$12 sps:$4 sm:$0xff]  }
 0x57b   :  { %3763 = vmatpush3.bf16.msra.mxu1 %v2075_v18  ;;  %4299 = vrcp.f32 %v2319_v13  ;;  %v4183_v13 = vld [vmem:[#allocation8 + $0x18] ss:$12 sps:$4 sm:$0xff]   ;;  %v4203_v17 = vld [vmem:[#allocation8 + $0x154] ss:$12 sps:$4 sm:$0xff]   ;;  %v4201_v18 = vld [vmem:[#allocation8 + $0x150] ss:$12 sps:$4 sm:$0xff]  }
 0x57c   :  { %3774 = vmatprep.subr.bf16.mxu1 %v4430_v22  ;;  %4301 = vrcp.f32 %v2446_v14  ;;  %v4191_v14 = vld [vmem:[#allocation8 + $0x4] ss:$12 sps:$4 sm:$0xff]  }
 0x57d   :  { %v2574_v26 = vpop.xlane.xlu1 %2573  ;;  %4303 = vrcp.f32 %v2449_v15  ;;  %v2582_v2 = vpop.permute.xlu0 %2581  ;;  %v4189_v15 = vld [vmem:[#allocation8] ss:$12 sps:$4 sm:$0xff]  }
 0x57e   :  { %4305 = vrcp.f32 %v2574_v26 }
 0x57f   :  { %4307 = vrcp.f32 %v2571_v36  ;;  %v4209_v36 = vld [vmem:[#allocation8 + $0x13c] ss:$12 sps:$4 sm:$0xff]  }
 0x581   :  { %v2327_v55 = vpop.permute.xlu1 %2326 }
 0x582   :  { %v2332_v54 = vsel %vm1944_vm2, %v2327_v55, 0 }
 0x583   :  { %v4290_v19 = vpop.eup %4289 }
 0x584   :  { %v4292_v58 = vpop.eup %4291  ;;  %v2065_v20 = vmul.f32 %v4290_v19, %v4282_v59  ;;  %v4176_v59 = vld [vmem:[#allocation8 + $0x64] ss:$12 sps:$4 sm:$0xff]  }
 0x585   :  { %v2066_v23 = vmul.f32 %v4292_v58, %v4284_v62  ;;  %v4294_v8 = vpop.eup %4293  ;;  %v4179_v62 = vld [vmem:[#allocation8 + $0x4c] ss:$12 sps:$4 sm:$0xff]  }
 0x586   :  { %v4296_v12 = vpop.eup %4295  ;;  %v2198_v27 = vmul.f32 %v4294_v8, %v4635_v47  ;;  %v4165_v47 = vld [vmem:[#allocation8 + $0xa8] ss:$12 sps:$4 sm:$0xff]   ;;  %v4207_v19 = vld [vmem:[#allocation8 + $0x138] ss:$12 sps:$4 sm:$0xff]  }
 0x587   :  { %v2067_v24 = vpack.c.bf16 %v2066_v23, %v2065_v20  ;;  %v2197_v28 = vmul.f32 %v4296_v12, %v4631_v43  ;;  %v4298_v29 = vpop.eup %4297  ;;  %v2587_v43 = vsel %vm1944_vm2, %v2582_v2, 0  ;;  %3146 = vmatpush1.bf16.msra.mxu0 %v4165_v47  ;;  %v4225_v2 = vld [vmem:[#allocation8 + $0xf0] ss:$12 sps:$4 sm:$0xff]  }
 0x588   :  { %v4300_v31 = vpop.eup %4299  ;;  %v2322_v39 = vmul.f32 %v4298_v29, %v4641_v51  ;;  %3147 = vmatprep.subr.bf16.mxu0 %v4170_v49  ;;  %v4173_v51 = vld [vmem:[#allocation8 + $0x7c] ss:$12 sps:$4 sm:$0xff]   ;;  %v4213_v29 = vld [vmem:[#allocation8 + $0x120] ss:$12 sps:$4 sm:$0xff]  }
 0x589   :  { %3765 = vmatmul.mubr.msk.bf16.vlgmr.msra.gmra.mxu1 %vm1916_vm3, %v2067_v24  ;;  %v2199_v30 = vpack.c.bf16 %v2198_v27, %v2197_v28  ;;  %v2323_v25 = vmul.f32 %v4300_v31, %v4639_v50  ;;  %v4302_v32 = vpop.eup %4301  ;;  %v4168_v50 = vld [vmem:[#allocation8 + $0x90] ss:$12 sps:$4 sm:$0xff]   ;;  %v4236_v49 = vld [vmem:[#allocation8 + $0xc0] ss:$12 sps:$4 sm:$0xff]  }
 0x58a   :  { %3775 = vmatpush3.bf16.msra.mxu1 %v2204_v21  ;;  %3776 = vmatprep.mubr.msk.bf16.mxu1 %vm4431_vm0, %v4430_v22  ;;  %v4304_v34 = vpop.eup %4303  ;;  %v2452_v38 = vmul.f32 %v4302_v32, %v4649_v57  ;;  %v4171_v57 = vld [vmem:[#allocation8 + $0x78] ss:$12 sps:$4 sm:$0xff]   ;;  %v4216_v31 = vld [vmem:[#allocation8 + $0x1b0] ss:$12 sps:$4 sm:$0xff]   ;;  %v4219_v32 = vld [vmem:[#allocation8 + $0x108] ss:$12 sps:$4 sm:$0xff]  }
 0x58b   :  { %3786 = vmatprep.subr.bf16.mxu1 %v4430_v22  ;;  %v2324_v33 = vpack.c.bf16 %v2323_v25, %v2322_v39  ;;  %v2453_v40 = vmul.f32 %v4304_v34, %v4647_v56  ;;  %v4306_v42 = vpop.eup %4305  ;;  %v4194_v56 = vld [vmem:[#allocation8 + $0x214] ss:$12 sps:$4 sm:$0xff]   ;;  %3148 = vmatpush1.bf16.msra.mxu0 %v4168_v50  ;;  %v4222_v34 = vld [vmem:[#allocation8 + $0x198] ss:$12 sps:$4 sm:$0xff]   ;;  %v4234_v47 = vld [vmem:[#allocation8 + $0x170] ss:$12 sps:$4 sm:$0xff]  }
 0x58c   :  { %v4308_v44 = vpop.eup %4307  ;;  %v2578_v53 = vmul.f32 %v4306_v42, %v4661_v7  ;;  %3149 = vmatprep.subr.bf16.mxu0 %v4173_v51  ;;  %v4204_v7 = vld [vmem:[#allocation8 + $0x1e0] ss:$12 sps:$4 sm:$0xff]   ;;  %v4238_v50 = vld [vmem:[#allocation8 + $0xc4] ss:$12 sps:$4 sm:$0xff]  }
 0x58d   :  { %v2454_v41 = vpack.c.bf16 %v2453_v40, %v2452_v38  ;;  %v2577_v45 = vmul.f32 %v4308_v44, %v4657_v3  ;;  %v4177_v3 = vld [vmem:[#allocation8 + $0x48] ss:$12 sps:$4 sm:$0xff]   ;;  %v4228_v42 = vld [vmem:[#allocation8 + $0x180] ss:$12 sps:$4 sm:$0xff]  }
 0x58f   :  { %v2579_v46 = vpack.c.bf16 %v2578_v53, %v2577_v45  ;;  %3150 = vmatpush1.bf16.msra.mxu0 %v4171_v57  ;;  %v4231_v45 = vld [vmem:[#allocation8 + $0xd8] ss:$12 sps:$4 sm:$0xff]  }
 0x590   :  { %3151 = vmatprep.subr.bf16.mxu0 %v4176_v59 }
 0x591   :  { %3777 = vmatmul.mubr.msk.bf16.vlgmr.msra.gmra.mxu1 %vm1916_vm3, %v2199_v30  ;;  %v4215_v30 = vld [vmem:[#allocation8 + $0x124] ss:$12 sps:$4 sm:$0xff]  }
 0x592   :  { %3787 = vmatpush3.bf16.msra.mxu1 %v2332_v54  ;;  %3788 = vmatprep.mubr.msk.bf16.mxu1 %vm4431_vm0, %v4430_v22  ;;  %v4218_v54 = vld [vmem:[#allocation8 + $0x1b4] ss:$12 sps:$4 sm:$0xff]  }
 0x593   :  { %3798 = vmatprep.subr.bf16.mxu1 %v4430_v22  ;;  %3152 = vmatpush1.bf16.msra.mxu0 %v4174_v61 }
 0x594   :  { %3153 = vmatprep.subr.bf16.mxu0 %v4179_v62 }
 0x597   :  { %3154 = vmatpush1.bf16.msra.mxu0 %v4177_v3  ;;  %v4239_v3 = vld [vmem:[#allocation8 + $0x158] ss:$12 sps:$4 sm:$0xff]  }
 0x598   :  { %3155 = vmatprep.subr.bf16.mxu0 %v4182_v6 }
 0x599   :  { %3789 = vmatmul.mubr.msk.bf16.vlgmr.msra.gmra.mxu1 %vm1916_vm3, %v2324_v33  ;;  %v4221_v33 = vld [vmem:[#allocation8 + $0x10c] ss:$12 sps:$4 sm:$0xff]  }
 0x59a   :  { %3799 = vmatpush3.bf16.msra.mxu1 %v2459_v35  ;;  %3800 = vmatprep.mubr.msk.bf16.mxu1 %vm4431_vm0, %v4430_v22  ;;  %v4224_v35 = vld [vmem:[#allocation8 + $0x19c] ss:$12 sps:$4 sm:$0xff]  }
 0x59b   :  { %3810 = vmatprep.subr.bf16.mxu1 %v4430_v22  ;;  %3156 = vmatpush1.bf16.msra.mxu0 %v4180_v5 }
 0x59c   :  { %3157 = vmatprep.subr.bf16.mxu0 %v4185_v10  ;;  %v4241_v10 = vld [vmem:[#allocation8 + $0x140] ss:$12 sps:$4 sm:$0xff]  }
 0x59f   :  { %3158 = vmatpush1.bf16.msra.mxu0 %v4183_v13 }
 0x5a0   :  { %3159 = vmatprep.subr.bf16.mxu0 %v4191_v14 }
 0x5a1   :  { %3801 = vmatmul.mubr.msk.bf16.vlgmr.msra.gmra.mxu1 %vm1916_vm3, %v2454_v41  ;;  %v4227_v41 = vld [vmem:[#allocation8 + $0xf4] ss:$12 sps:$4 sm:$0xff]  }
 0x5a2   :  { %3811 = vmatpush3.bf16.msra.mxu1 %v2587_v43  ;;  %3812 = vmatprep.mubr.msk.bf16.mxu1 %vm4431_vm0, %v4430_v22  ;;  %v4230_v43 = vld [vmem:[#allocation8 + $0x184] ss:$12 sps:$4 sm:$0xff]  }
 0x5a3   :  { %3188 = vmatprep.subr.bf16.mxu1 %v4188_v37  ;;  %3160 = vmatpush1.bf16.msra.mxu0 %v4189_v15  ;;  %v4243_v15 = vld [vmem:[#allocation8 + $0x230] ss:$12 sps:$4 sm:$0xff]  }
 0x5a4   :  { %3161 = vmatprep.subr.bf16.mxu0 %v4197_v4 }
 0x5a7   :  { %3162 = vmatpush2.bf16.msra.mxu0 %v4195_v16  ;;  %v4244_v16 = vld [vmem:[#allocation8 + $0x128] ss:$12 sps:$4 sm:$0xff]  }
 0x5a8   :  { %3163 = vmatprep.subr.bf16.mxu0 %v4203_v17  ;;  %v4245_v17 = vld [vmem:[#allocation8 + $0x68] ss:$12 sps:$4 sm:$0xff]  }
 0x5a9   :  { %3813 = vmatmul.mubr.msk.bf16.vlgmr.msra.gmra.mxu1 %vm1916_vm3, %v2579_v46  ;;  %v4233_v46 = vld [vmem:[#allocation8 + $0xdc] ss:$12 sps:$4 sm:$0xff]  }
 0x5aa   :  { %3220 = vmatprep.mubr.bf16.mxu1 %v4429_v0  ;;  %3189 = vmatpush1.bf16.msra.mxu1 %v4186_v52  ;;  %v4200_v0 = vld [vmem:[#allocation8 + $0x1fc] ss:$12 sps:$4 sm:$0xff]  }
 0x5ab   :  { %3190 = vmatprep.subr.bf16.mxu1 %v4194_v56  ;;  %3164 = vmatpush2.bf16.msra.mxu0 %v4201_v18  ;;  %v4246_v18 = vld [vmem:[#allocation8 + $0x218] ss:$12 sps:$4 sm:$0xff]  }
 0x5ac   :  { %3165 = vmatprep.subr.bf16.mxu0 %v4209_v36  ;;  %v4247_v36 = vld [vmem:[#allocation8 + $0x110] ss:$12 sps:$4 sm:$0xff]  }
 0x5ae   :  { %3191 = vmatpush1.bf16.msra.mxu1 %v4192_v60 }
 0x5af   :  { %3192 = vmatprep.subr.bf16.mxu1 %v4200_v0  ;;  %3166 = vmatpush2.bf16.msra.mxu0 %v4207_v19  ;;  %v4248_v19 = vld [vmem:[#allocation8 + $0x50] ss:$12 sps:$4 sm:$0xff]  }
 0x5b0   :  { %3167 = vmatprep.subr.bf16.mxu0 %v4215_v30  ;;  %v2746_v30 = vlaneseq }
 0x5b2   :  { %3193 = vmatpush1.bf16.msra.mxu1 %v4198_v63  ;;  %v4235_v63 = vld [vmem:[#allocation8 + $0xb0] ss:$12 sps:$4 sm:$0xff]  }
 0x5b3   :  { %3194 = vmatprep.subr.bf16.mxu1 %v4206_v1  ;;  %3168 = vmatpush2.bf16.msra.mxu0 %v4213_v29  ;;  %v4260_v29 = vld [vmem:[#allocation8 + $0x188] ss:$12 sps:$4 sm:$0xff]  }
 0x5b4   :  { %3169 = vmatprep.subr.bf16.mxu0 %v4221_v33 }
 0x5b6   :  { %3195 = vmatpush1.bf16.msra.mxu1 %v4204_v7 }
 0x5b7   :  { %3196 = vmatprep.subr.bf16.mxu1 %v4212_v9  ;;  %3170 = vmatpush2.bf16.msra.mxu0 %v4219_v32  ;;  %v4240_v9 = vld [vmem:[#allocation8 + $0x98] ss:$12 sps:$4 sm:$0xff]  }
 0x5b8   :  { %3171 = vmatprep.subr.bf16.mxu0 %v4227_v41 }
 0x5ba   :  { %3197 = vmatpush1.bf16.msra.mxu1 %v4210_v11  ;;  %v4242_v11 = vld [vmem:[#allocation8 + $0x80] ss:$12 sps:$4 sm:$0xff]  }
 0x5bb   :  { %3198 = vmatprep.subr.bf16.mxu1 %v4218_v54  ;;  %3172 = vmatpush2.bf16.msra.mxu0 %v4225_v2 }
 0x5bc   :  { %3173 = vmatprep.subr.bf16.mxu0 %v4233_v46 }
 0x5be   :  { %3199 = vmatpush1.bf16.msra.mxu1 %v4216_v31  ;;  %v2747_v31 = vshrl.u32 %v2746_v30, 7 }
 0x5bf   :  { %3200 = vmatprep.subr.bf16.mxu1 %v4224_v35  ;;  %3174 = vmatpush2.bf16.msra.mxu0 %v4231_v45 }
 0x5c0   :  { %3175 = vmatprep.subr.bf16.mxu0 %v4238_v50  ;;  %v2748_v54 = vsub.s32 0, %v2747_v31  ;;  %v2756_v50 = vsub.s32 2, %v2747_v31 }
 0x5c2   :  { %3201 = vmatpush1.bf16.msra.mxu1 %v4222_v34 }
 0x5c3   :  { %3202 = vmatprep.subr.bf16.mxu1 %v4230_v43  ;;  %3176 = vmatpush2.bf16.msra.mxu0 %v4236_v49 }
 0x5c4   :  { %3816 = vmatprep.subr.bf16.mxu0 %v4430_v22 }
 0x5c6   :  { %3203 = vmatpush1.bf16.msra.mxu1 %v4228_v42 }
 0x5c7   :  { %3693 = vmatprep.subr.bf16.mxu1 %v4234_v47 }
 0x649   :  { %v2111_v58 = vpop.f32.mrf.mxu1 }
 0x64b   :  { %v3766_v20 = vpop.f32.mrf.mxu1 }
 0x64c   :  { %v4250_v20 = vld [vmem:[#allocation8 + $0xf8] ss:$12 sps:$4 sm:$0xff]  }
 0x64d   :  { %v2114_v23 = vpop.f32.mrf.mxu1 }
 0x64f   :  { %v3767_v24 = vpop.f32.mrf.mxu1 }
 0x650   :  { %v4252_v24 = vld [vmem:[#allocation8 + $0x1e8] ss:$12 sps:$4 sm:$0xff]  }
 0x651   :  { %v2240_v8 = vpop.f32.mrf.mxu1 }
 0x652   :  { %2247 = vst.msk [vmem:[#allocation2 + $0x8] sm:$0xff] %vm1868_vm1, %v2240_v8  ;;  %v4253_v8 = vld [vmem:[#allocation8 + $0xe0] ss:$12 sps:$4 sm:$0xff]  }
 0x653   :  { %v3778_v26 = vpop.f32.mrf.mxu1 }
 0x654   :  { %v4254_v26 = vld [vmem:[#allocation8 + $0x20] ss:$12 sps:$4 sm:$0xff]  }
 0x655   :  { %v2243_v21 = vpop.f32.mrf.mxu1 }
 0x656   :  { %2248 = vst.msk [vmem:[#allocation2 + $0x20] sm:$0x3] %vm1990_vm5, %v2243_v21  ;;  %v4255_v21 = vld [vmem:[#allocation8 + $0x1d0] ss:$12 sps:$4 sm:$0xff]  }
 0x657   :  { %v3779_v12 = vpop.f32.mrf.mxu1 }
 0x658   :  { %v4256_v12 = vld [vmem:[#allocation8 + $0xc8] ss:$12 sps:$4 sm:$0xff]  }
 0x659   :  { %v2368_v27 = vpop.f32.mrf.mxu1 }
 0x65b   :  { %v3790_v28 = vpop.f32.mrf.mxu1 }
 0x65c   :  { %v4258_v28 = vld [vmem:[#allocation8 + $0x1b8] ss:$12 sps:$4 sm:$0xff]  }
 0x65d   :  { %v2371_v55 = vpop.f32.mrf.mxu1 }
 0x65f   :  { %v3791_v39 = vpop.f32.mrf.mxu1 }
 0x660   :  { %v1867_v39 = vld [vmem:[%s4740_s3] sm:$0x7]  ;;  %s4433_s3 = smov [#allocation11]  }
 0x661   :  { %v2495_v25 = vpop.f32.mrf.mxu1  ;;  %v2749_v33 = vrot.slane %v1867_v39, %v2748_v54  ;;  %s3324_s20 = sshll.u32 %s4433_s3, 4  ;;  %s3325_s20 = int_to_ptr.vmem [resolvable:$true] %s3324_s20 }
 0x662   :  { %2502 = vst.msk [vmem:[#allocation2 + $0x10] sm:$0xff] %vm1868_vm1, %v2495_v25  ;;  %v2752_v25 = vsub.s32 1, %v2747_v31  ;;  %s4389_s21 = scalar_lea.vmem %s3325_s20, 768  ;;  %p4394_p7 = scmp.lt.s32.totalorder %s3325_s20, %s3325_s20 }
 0x663   :  { %v3802_v38 = vpop.f32.mrf.mxu1  ;;  %p4390_p6 = scmp.ne.s32.totalorder %s3325_s20, %s4389_s21  ;;  %p4395_p8 = scmp.lt.s32.totalorder %s4389_s21, %s4389_s21 }
 0x664   :  { %v2753_v34 = vrot.slane %v1867_v39, %v2752_v25 }
 0x665   :  { %v2498_v40 = vpop.f32.mrf.mxu1  ;;  %p4396_p9 = por %p4395_p8, %p4394_p7 }
 0x666   :  { %2503 = vst.msk [vmem:[#allocation2 + $0x28] sm:$0x3] %vm1990_vm5, %v2498_v40 }
 0x667   :  { %v3803_v44 = vpop.f32.mrf.mxu1  ;;  %p4397_p10 = pnand %p4396_p9, %p4390_p6 }
 0x669   :  { %v2623_v53 = vpop.f32.mrf.mxu1 }
 0x66a   :  { %2632 = vrot.lane.b32.xlu1 %v2623_v53, %s4432_s2 }
 0x66b   :  { %v3814_v48 = vpop.f32.mrf.mxu1 }
 0x66d   :  { %v2626_v51 = vpop.f32.mrf.mxu1 }
 0x66e   :  { %2377 = vrot.lane.b32.xlu1 %v2368_v27, %s4432_s2  ;;  %2634 = vrot.lane.b32.xlu0 %v2626_v51, %s4432_s2  ;;  %v4257_v27 = vld [vmem:[#allocation8 + $0x8] ss:$12 sps:$4 sm:$0xff]  }
 0x66f   :  { %v3815_v52 = vpop.f32.mrf.mxu1 }
 0x672   :  { %2120 = vrot.lane.b32.xlu1 %v2111_v58, %s4432_s2  ;;  %2379 = vrot.lane.b32.xlu0 %v2371_v55, %s4432_s2  ;;  %v4249_v58 = vld [vmem:[#allocation8 + $0x200] ss:$12 sps:$4 sm:$0xff]  }
 0x673   :  { %v4259_v55 = vld [vmem:[#allocation8 + $0x1a0] ss:$12 sps:$4 sm:$0xff]  }
 0x676   :  { %2122 = vrot.lane.b32.xlu0 %v2114_v23, %s4432_s2  ;;  %v4251_v23 = vld [vmem:[#allocation8 + $0x38] ss:$12 sps:$4 sm:$0xff]  }
 0x6dc   :  { %v2633_v37 = vpop.permute.xlu1 %2632 }
 0x6dd   :  { %2638 = vst.msk [vmem:[#allocation2 + $0x10] sm:$0xff] %vm2126_vm6, %v2633_v37 }
 0x6e0   :  { %v2378_v56 = vpop.permute.xlu1 %2377  ;;  %v2635_v57 = vpop.permute.xlu0 %2634 }
 0x6e1   :  { %2383 = vst.msk [vmem:[#allocation2 + $0x8] sm:$0xff] %vm2126_vm6, %v2378_v56  ;;  %v2757_v56 = vrot.slane %v1867_v39, %v2756_v50 }
 0x6e2   :  { %2639 = vst.msk [vmem:[#allocation2 + $0x28] sm:$0x3] %vm2128_vm7, %v2635_v57 }
 0x6e4   :  { %v2121_v59 = vpop.permute.xlu1 %2120  ;;  %v2380_v60 = vpop.permute.xlu0 %2379  ;;  %v2642_v61 = vld [vmem:[#allocation2 + $0x10] sm:$0xff] }
 0x6e5   :  { %2127 = vst.msk [vmem:[#allocation2] sm:$0xff] %vm2126_vm6, %v2121_v59 }
 0x6e6   :  { %2384 = vst.msk [vmem:[#allocation2 + $0x20] sm:$0x3] %vm2128_vm7, %v2380_v60 }
 0x6e8   :  { %v2123_v0 = vpop.permute.xlu0 %2122  ;;  %v2641_v6 = vld [vmem:[#allocation2 + $0x8] sm:$0xff] }
 0x6e9   :  { %v2645_v62 = vld [vmem:[#allocation2 + $0x28] sm:$0x3]  ;;  %2129 = vst.msk [vmem:[#allocation2 + $0x18] sm:$0x3] %vm2128_vm7, %v2123_v0 }
 0x6ea   :  { %v4715_v1 = vpack.c.bf16 %v2645_v62, %v2642_v61 }
 0x6ec   :  { %3221 = vmatmul.mubr.bf16.vlgmr.msra.gmra.mxu1 %v4715_v1  ;;  %v2640_v13 = vld [vmem:[#allocation2] sm:$0xff] }
 0x6ed   :  { %3694 = vmatpush3.bf16.msra.mxu1 %v4235_v63  ;;  %v2644_v7 = vld [vmem:[#allocation2 + $0x20] sm:$0x3] }
 0x6ee   :  { %3695 = vmatprep.subr.bf16.mxu1 %v4239_v3  ;;  %v2647_v5 = vpack.c.bf16 %v2644_v7, %v2641_v6 }
 0x6f0   :  { %3177 = vmatprep.mubr.bf16.mxu0 %v2647_v5  ;;  %3263 = vmatprep.mubr.bf16.mxu1 %v2647_v5  ;;  %v2643_v14 = vld [vmem:[#allocation2 + $0x18] sm:$0x3] }
 0x6f1   :  { %3696 = vmatpush3.bf16.msra.mxu1 %v4240_v9  ;;  %v2646_v4 = vpack.c.bf16 %v2643_v14, %v2640_v13 }
 0x6f2   :  { %3697 = vmatprep.subr.bf16.mxu1 %v4241_v10 }
 0x6f3   :  { %3178 = vmatmul.mubr.bf16.vlgmr.msra.gmra.mxu0 %v2646_v4 }
 0x6f4   :  { %3817 = vmatpush3.bf16.msra.mxu0 %v4243_v15  ;;  %3832 = vmatprep.mubr.msk.bf16.mxu0 %vm4431_vm0, %v4430_v22 }
 0x6f5   :  { %3698 = vmatpush3.bf16.msra.mxu1 %v4242_v11  ;;  %3818 = vmatprep.subr.bf16.mxu0 %v4430_v22 }
 0x6f6   :  { %3699 = vmatprep.subr.bf16.mxu1 %v4244_v16 }
 0x6f8   :  { %3819 = vmatpush3.bf16.msra.mxu0 %v4246_v18 }
 0x6f9   :  { %3700 = vmatpush3.bf16.msra.mxu1 %v4245_v17  ;;  %3820 = vmatprep.subr.bf16.mxu0 %v4430_v22 }
 0x6fa   :  { %3701 = vmatprep.subr.bf16.mxu1 %v4247_v36 }
 0x6fc   :  { %3821 = vmatpush3.bf16.msra.mxu0 %v4249_v58 }
 0x6fd   :  { %3702 = vmatpush3.bf16.msra.mxu1 %v4248_v19  ;;  %3822 = vmatprep.subr.bf16.mxu0 %v4430_v22 }
 0x6fe   :  { %3703 = vmatprep.subr.bf16.mxu1 %v4250_v20 }
 0x700   :  { %3823 = vmatpush3.bf16.msra.mxu0 %v4252_v24 }
 0x701   :  { %3704 = vmatpush3.bf16.msra.mxu1 %v4251_v23  ;;  %3824 = vmatprep.subr.bf16.mxu0 %v4430_v22 }
 0x702   :  { %3705 = vmatprep.subr.bf16.mxu1 %v4253_v8 }
 0x704   :  { %3825 = vmatpush3.bf16.msra.mxu0 %v4255_v21 }
 0x705   :  { %3706 = vmatpush3.bf16.msra.mxu1 %v4254_v26  ;;  %3826 = vmatprep.subr.bf16.mxu0 %v4430_v22 }
 0x706   :  { %3707 = vmatprep.subr.bf16.mxu1 %v4256_v12 }
 0x708   :  { %3827 = vmatpush3.bf16.msra.mxu0 %v4258_v28 }
 0x709   :  { %3708 = vmatpush3.bf16.msra.mxu1 %v4257_v27  ;;  %3828 = vmatprep.subr.bf16.mxu0 %v4430_v22 }
 0x70c   :  { %3264 = vmatmul.mubr.bf16.vlgmr.msra.gmra.mxu1 %v2646_v4  ;;  %3829 = vmatpush3.bf16.msra.mxu0 %v4259_v55 }
 0x70d   :  { %3830 = vmatprep.subr.bf16.mxu0 %v4430_v22 }
 0x710   :  { %3831 = vmatpush3.bf16.msra.mxu0 %v4260_v29 }
 0x713   :  { %3833 = vmatmul.mubr.bf16.vlgmr.msra.gmra.mxu0 %v4715_v1 }
 0x7ac   :  { %v3222_v32 = vpop.f32.mrf.mxu1 }
 0x7ae   :  { %v3224_v35 = vpop.f32.mrf.mxu1 }
 0x7b0   :  { %v3226_v42 = vpop.f32.mrf.mxu1 }
 0x7b2   :  { %v3228_v48 = vpop.f32.mrf.mxu1 }
 0x7b3   :  { %v3179_v38 = vpop.f32.mrf.mxu0 }
 0x7b4   :  { %v3180_v40 = vadd.f32 %v3179_v38, %v2749_v33 }
 0x7b5   :  { %v3181_v2 = vpop.f32.mrf.mxu0 }
 0x7b6   :  { %v3223_v41 = vadd.f32 %v3222_v32, %v3180_v40  ;;  %v3182_v22 = vadd.f32 %v3181_v2, %v2753_v34 }
 0x7b7   :  { %v3183_v43 = vpop.f32.mrf.mxu0 }
 0x7b8   :  { %3313 = vst [vmem:[#allocation11] sm:$0xff] %v3223_v41  ;;  %v3225_v44 = vadd.f32 %v3224_v35, %v3182_v22  ;;  %v3184_v53 = vadd.f32 %v3183_v43, %v2749_v33 }
 0x7b9   :  { %v3185_v45 = vpop.f32.mrf.mxu0 }
 0x7ba   :  { %3314 = vst [vmem:[#allocation11 + $0x8] sm:$0xff] %v3225_v44  ;;  %v3227_v46 = vadd.f32 %v3226_v42, %v3184_v53  ;;  %v3186_v47 = vadd.f32 %v3185_v45, %v2753_v34 }
 0x7bc   :  { %3316 = vst [vmem:[#allocation11 + $0x18] sm:$0x3] %v3227_v46  ;;  %v3229_v49 = vadd.f32 %v3228_v48, %v3186_v47 }
 0x7be   :  { %3317 = vst [vmem:[#allocation11 + $0x20] sm:$0x3] %v3229_v49 }
 0x7cc   :  { %v3709_v51 = vpop.f32.mrf.mxu1 }
 0x7ce   :  { %v3710_v52 = vpop.f32.mrf.mxu1 }
 0x7cf   :  { %v3711_v37 = vadd.f32 %v3710_v52, %v3709_v51 }
 0x7d0   :  { %v3712_v57 = vpop.f32.mrf.mxu1 }
 0x7d1   :  { %v3266_v0 = vadd.f32 %v3711_v37, %v2757_v56 }
 0x7d2   :  { %v3713_v59 = vpop.f32.mrf.mxu1 }
 0x7d3   :  { %v3714_v60 = vadd.f32 %v3713_v59, %v3712_v57  ;;  %v3306_v61 = vpop.f32.mrf.mxu0 }
 0x7d4   :  { %v3307_v62 = vadd.f32 %v3306_v61, %v3266_v0 }
 0x7d5   :  { %v3834_v63 = vpop.f32.mrf.mxu0  ;;  %v3269_v1 = vadd.f32 %v3714_v60, %v2757_v56 }
 0x7d6   :  { %3315 = vst [vmem:[#allocation11 + $0x10] sm:$0xff] %v3307_v62 }
 0x7d7   :  { %v3309_v3 = vpop.f32.mrf.mxu0 }
 0x7d8   :  { %v3310_v6 = vadd.f32 %v3309_v3, %v3269_v1 }
 0x7d9   :  { %v3835_v7 = vpop.f32.mrf.mxu0 }
 0x7da   :  { %3318 = vst [vmem:[#allocation11 + $0x28] sm:$0x3] %v3310_v6 }
 0x7db   :  { %4400 = shalt.err (!%p4397_p10)
}
 0x7dc   :  { %3330 = dma.vmem_to_hbm [thread:$0]  %s3325_s20, 768, %s4742_s5, [#allocation5], %s4421_s28, %s4421_s28, %s4422_s29  }
 0x7dd   :  { %4415 = dma.done.wait [#allocation5], 768  }
 0x7de   :  { %4416 = vsyncadd [#allocation5], 4294966528 }
 0x7df   :  { %3334 = vsyncpa [#allocation4], 1 }
 0x7e0   :  { %3335 = vsyncpa [#allocation7], 1 }
 0x7e1   :  { %3336 = vsyncpa [#allocation10], 1 }
 0x7e2   :  { %3337 = vsyncpa [#allocation5], 1 }

</bundles_post_ra>
